<compile_context>
chip_gen: v7x
topology: tpu7x:2x2x1
jax: 0.10.0
libtpu: 0.0.40
codegen_flags: <defaults>
</compile_context>

<pallas_src>
import jax
import jax.numpy as jnp
import numpy as np
from jax import lax
from jax.experimental import pallas as pl
from jax.experimental.pallas import tpu as pltpu

K = 31          # Conv1d kernel size
P = 15          # Conv1d padding
EPS = 1e-5
MM_DTYPE = jnp.bfloat16    # MXU operand dtype (per perf review)
ACT_DTYPE = jnp.bfloat16   # inter-pass activation storage (y1, y2)


def _round_up(x, m):
    return (x + m - 1) // m * m


# --------------------------------------------------------------------------
# Kernels (all refs are (C, L)-layout: channels on sublanes, length on lanes)
# --------------------------------------------------------------------------
def _conv1_kernel(xpad_ref, w_ref, y_ref, s_ref, q_ref, col_ref):
    """Conv1d #1 as one tap-stacked MXU matmul + BN1 per-sample partials.

    xpad_ref: (Cin, Lp+2P) bf16 pooled+zero-padded input,  w_ref: (Cmid, KC1) bf16
    y_ref: (Cmid, Lp) bf16,  s_ref/q_ref: (Cmid, 1) f32,  col_ref: (KC1, Lp) bf16
    """
    Cin = xpad_ref.shape[0]
    Lp = xpad_ref.shape[1] - 2 * P
    KCpad = col_ref.shape[0]

    xpad = xpad_ref[...]                       # single load; slices stay in vregs

    # Zero the contraction-padding rows every step (scratch is uninitialised and
    # 0-weight * NaN would poison the accumulator; cannot use a step-0 guard
    # because the parallel grid may be split across TensorCores).
    if KCpad > K * Cin:
        col_ref[K * Cin:, :] = jnp.zeros((KCpad - K * Cin, Lp), col_ref.dtype)

    # im2col: tap k occupies rows [k*Cin, (k+1)*Cin).  Every write is a full
    # Lp-lane slab (no lane masking); the shifted read is an XLU lane rotate.
    for k in range(K):                         # unrolled at trace time
        col_ref[k * Cin:(k + 1) * Cin, :] = xpad[:, k:k + Lp]

    # One MXU matmul, contraction = KCpad (128-aligned), bf16 x bf16 -> f32 acc.
    y = jnp.dot(w_ref[...], col_ref[...], preferred_element_type=jnp.float32)

    # BN1 partial stats from the f32 accumulator (before the bf16 store cast).
    s_ref[...] = jnp.sum(y, axis=1, keepdims=True)
    q_ref[...] = jnp.sum(y * y, axis=1, keepdims=True)

    y_ref[...] = y.astype(y_ref.dtype)         # lane-dense store


def _bn1_conv2_kernel(y1_ref, sc_ref, sh_ref, w_ref, y_ref, s_ref, q_ref,
                      pad_ref, col_ref):
    """BN1 (precomputed scale/shift) -> ReLU -> Conv1d #2 -> BN2 partials."""
    Cmid, Lp = y1_ref.shape
    KCpad = col_ref.shape[0]

    # BN + ReLU in f32 on the VPU, then cast to the bf16 matmul operand.
    h = jnp.maximum(y1_ref[...].astype(jnp.float32) * sc_ref[...] + sh_ref[...],
                    0.0)

    # Zero-pad along L into scratch; only the two P-wide halos are cleared.
    pad_ref[:, :P] = jnp.zeros((Cmid, P), pad_ref.dtype)
    pad_ref[:, P + Lp:] = jnp.zeros((Cmid, P), pad_ref.dtype)
    pad_ref[:, P:P + Lp] = h.astype(pad_ref.dtype)
    hp = pad_ref[...]

    if KCpad > K * Cmid:
        col_ref[K * Cmid:, :] = jnp.zeros((KCpad - K * Cmid, Lp), col_ref.dtype)
    for k in range(K):
        col_ref[k * Cmid:(k + 1) * Cmid, :] = hp[:, k:k + Lp]

    y = jnp.dot(w_ref[...], col_ref[...], preferred_element_type=jnp.float32)
    s_ref[...] = jnp.sum(y, axis=1, keepdims=True)
    q_ref[...] = jnp.sum(y * y, axis=1, keepdims=True)
    y_ref[...] = y.astype(y_ref.dtype)


def _bn2_relu_kernel(y2_ref, sc_ref, sh_ref, o_ref):
    """Final BN #2 (precomputed scale/shift) -> ReLU, written directly in NCL."""
    o_ref[...] = jnp.maximum(
        y2_ref[...].astype(jnp.float32) * sc_ref[...] + sh_ref[...], 0.0
    ).astype(o_ref.dtype)


# --------------------------------------------------------------------------
# Wrapper
# --------------------------------------------------------------------------
def _bn_scale_shift(psum, psq, gamma, beta, count):
    """Fold per-sample (sum, sum-sq) f32 partials into per-channel scale/shift."""
    mean = jnp.sum(psum[:, :, 0], axis=0) / count              # (C,)
    msq = jnp.sum(psq[:, :, 0], axis=0) / count
    # Biased variance (PyTorch training-mode BN); clamp: E[y^2]-E[y]^2 can go
    # epsilon-negative in f32.  TODO(synk): Welford-style combine if activations
    # ever have large offsets relative to their spread.
    var = jnp.maximum(msq - mean * mean, 0.0)
    scale = gamma.astype(jnp.float32) * lax.rsqrt(var + EPS)
    shift = beta.astype(jnp.float32) - mean * scale
    return scale[:, None], shift[:, None]                      # (C, 1)


def _vmem_limit_bytes():
    # Per-generation budget: ~3/4 of physical VMEM (v5e/v6e 128 MiB -> 96 MiB,
    # v7x 64 MiB -> 48 MiB), capped at 100 MiB.
    try:
        cap = pltpu.get_tpu_info().vmem_capacity_bytes
    except Exception:
        cap = 64 * 1024 * 1024
    return int(min(cap * 3 // 4, 100 * 1024 * 1024))


@jax.jit
def down_forward(x_ncl, w1, g1, b1, w2, g2, b2):
    """x_ncl: (N, Cin, L) f32, PyTorch NCL layout.  Returns (N, Cout, L//2) f32."""
    N, Cin, L = x_ncl.shape
    assert L % 2 == 0, "MaxPool1d(2) assumes even L"
    Lp = L // 2
    Cmid = w1.shape[0]
    Cout = w2.shape[0]
    KC1 = _round_up(K * Cin, 128)
    KC2 = _round_up(K * Cmid, 128)
    count = N * Lp

    # MaxPool1d(2) + zero-pad + bf16 cast: one fused XLA pass over the input.
    xp = jnp.max(x_ncl.reshape(N, Cin, Lp, 2), axis=-1)
    xpad = jnp.pad(xp, ((0, 0), (0, 0), (P, P))).astype(MM_DTYPE)   # (N,Cin,Lp+2P)

    # Tap-stacked weights, contraction zero-padded to the MXU edge:
    #   w_s[m, k*C + c] = w[m, c, k]
    w1s = jnp.transpose(w1, (0, 2, 1)).reshape(Cmid, K * Cin)
    w1s = jnp.pad(w1s, ((0, 0), (0, KC1 - K * Cin))).astype(MM_DTYPE)
    w2s = jnp.transpose(w2, (0, 2, 1)).reshape(Cout, K * Cmid)
    w2s = jnp.pad(w2s, ((0, 0), (0, KC2 - K * Cmid))).astype(MM_DTYPE)

    cparams = pltpu.CompilerParams(
        dimension_semantics=("parallel",),        # megacore sharding on v7x
        vmem_limit_bytes=_vmem_limit_bytes())

    grid = (N,)   # one sample per step; exact (no dropped remainder)

    # ---- pass 1: conv1 (+ BN1 per-sample partial stats) ----
    y1, s1, q1 = pl.pallas_call(
        _conv1_kernel,
        grid=grid,
        in_specs=[
            pl.BlockSpec((None, Cin, Lp + 2 * P), lambda i: (i, 0, 0)),
            pl.BlockSpec((Cmid, KC1), lambda i: (0, 0)),
        ],
        out_specs=(
            pl.BlockSpec((None, Cmid, Lp), lambda i: (i, 0, 0)),
            pl.BlockSpec((None, Cmid, 1), lambda i: (i, 0, 0)),
            pl.BlockSpec((None, Cmid, 1), lambda i: (i, 0, 0)),
        ),
        out_shape=(
            jax.ShapeDtypeStruct((N, Cmid, Lp), ACT_DTYPE),
            jax.ShapeDtypeStruct((N, Cmid, 1), jnp.float32),
            jax.ShapeDtypeStruct((N, Cmid, 1), jnp.float32),
        ),
        scratch_shapes=[pltpu.VMEM((KC1, Lp), MM_DTYPE)],
        compiler_params=cparams,
    )(xpad, w1s)

    sc1, sh1 = _bn_scale_shift(s1, q1, g1, b1, count)

    # ---- pass 2: BN1 + ReLU + conv2 (+ BN2 per-sample partial stats) ----
    y2, s2, q2 = pl.pallas_call(
        _bn1_conv2_kernel,
        grid=grid,
        in_specs=[
            pl.BlockSpec((None, Cmid, Lp), lambda i: (i, 0, 0)),
            pl.BlockSpec((Cmid, 1), lambda i: (0, 0)),
            pl.BlockSpec((Cmid, 1), lambda i: (0, 0)),
            pl.BlockSpec((Cout, KC2), lambda i: (0, 0)),
        ],
        out_specs=(
            pl.BlockSpec((None, Cout, Lp), lambda i: (i, 0, 0)),
            pl.BlockSpec((None, Cout, 1), lambda i: (i, 0, 0)),
            pl.BlockSpec((None, Cout, 1), lambda i: (i, 0, 0)),
        ),
        out_shape=(
            jax.ShapeDtypeStruct((N, Cout, Lp), ACT_DTYPE),
            jax.ShapeDtypeStruct((N, Cout, 1), jnp.float32),
            jax.ShapeDtypeStruct((N, Cout, 1), jnp.float32),
        ),
        scratch_shapes=[
            pltpu.VMEM((Cmid, Lp + 2 * P), MM_DTYPE),
            pltpu.VMEM((KC2, Lp), MM_DTYPE),
        ],
        compiler_params=cparams,
    )(y1, sc1, sh1, w2s)

    sc2, sh2 = _bn_scale_shift(s2, q2, g2, b2, count)

    # ---- pass 3: BN2 + ReLU, lane-dense, written directly in NCL ----
    out = pl.pallas_call(
        _bn2_relu_kernel,
        grid=grid,
        in_specs=[
            pl.BlockSpec((None, Cout, Lp), lambda i: (i, 0, 0)),
            pl.BlockSpec((Cout, 1), lambda i: (0, 0)),
            pl.BlockSpec((Cout, 1), lambda i: (0, 0)),
        ],
        out_specs=pl.BlockSpec((None, Cout, Lp), lambda i: (i, 0, 0)),
        out_shape=jax.ShapeDtypeStruct((N, Cout, Lp), jnp.float32),
        compiler_params=cparams,
    )(y2, sc2, sh2)

    return out                                                   # already NCL


# --------------------------------------------------------------------------
# Pure-JAX f32 reference (PyTorch training-mode forward)
# --------------------------------------------------------------------------
def ref_down(x, w1, g1, b1, w2, g2, b2):
    N, Cin, L = x.shape
    xp = x.reshape(N, Cin, L // 2, 2).max(axis=-1)

    def conv_bn_relu(h, w, g, b):
        y = lax.conv_general_dilated(
            h, w, window_strides=(1,), padding=[(P, P)],
            dimension_numbers=('NCH', 'OIH', 'NCH'),
            precision=lax.Precision.HIGHEST)
        m = jnp.mean(y, axis=(0, 2), keepdims=True)
        v = jnp.mean(jnp.square(y - m), axis=(0, 2), keepdims=True)
        y = (y - m) * lax.rsqrt(v + EPS) * g.reshape(1, -1, 1) + b.reshape(1, -1, 1)
        return jnp.maximum(y, 0.0)

    h = conv_bn_relu(xp, w1, g1, b1)
    return conv_bn_relu(h, w2, g2, b2)


if __name__ == "__main__":
    key = jax.random.PRNGKey(0)
    N, Cin, Cout, L = 8, 4, 8, 16          # Down(in_channels=4, out_channels=8)
    Cmid = Cout                            # DoubleConv mid_channels defaults to out

    ks = jax.random.split(key, 7)
    x = jax.random.normal(ks[0], (N, Cin, L), jnp.float32)
    # Fan-in-scaled synthetic weights (PyTorch-like init, keeps conv gain ~1).
    w1 = jax.random.normal(ks[1], (Cmid, Cin, K), jnp.float32) / np.sqrt(Cin * K)
    w2 = jax.random.normal(ks[2], (Cout, Cmid, K), jnp.float32) / np.sqrt(Cmid * K)
    g1 = 1.0 + 0.1 * jax.random.normal(ks[3], (Cmid,), jnp.float32)
    b1 = 0.1 * jax.random.normal(ks[4], (Cmid,), jnp.float32)
    g2 = 1.0 + 0.1 * jax.random.normal(ks[5], (Cout,), jnp.float32)
    b2 = 0.1 * jax.random.normal(ks[6], (Cout,), jnp.float32)

    y = jax.block_until_ready(down_forward(x, w1, g1, b1, w2, g2, b2))
    y_ref = ref_down(x, w1, g1, b1, w2, g2, b2)

    assert y.shape == (N, Cout, L // 2)
    # Tolerance sized for bf16 MXU operands + bf16 inter-pass activations going
    # through two conv+BN layers vs. a pure-f32 HIGHEST-precision reference.
    # (Set MM_DTYPE = ACT_DTYPE = jnp.float32 above for ~1e-3-level agreement.)
    np.testing.assert_allclose(np.asarray(y, np.float32), np.asarray(y_ref),
                               rtol=3e-2, atol=3e-2)
    print("KERNEL_OK")
</pallas_src>

<mosaic_0001>
module attributes {stable_mosaic.version = 11 : i64} {
  func.func @_conv1_kernel(%arg0: i32, %arg1: memref<1x4x38xbf16, #tpu.memory_space<vmem>>, %arg2: memref<8x128xbf16, #tpu.memory_space<vmem>>, %arg3: memref<1x8x8xbf16, #tpu.memory_space<vmem>>, %arg4: memref<1x8x1xf32, #tpu.memory_space<vmem>>, %arg5: memref<1x8x1xf32, #tpu.memory_space<vmem>>, %arg6: memref<128x8xbf16, #tpu.memory_space<vmem>>) attributes {dimension_semantics = [#tpu.dimension_semantics<parallel>], iteration_bounds = array<i64: 8>, scalar_prefetch = 0 : i64, scratch_operands = 1 : i64, tpu.core_type = #tpu.core_type<tc>, window_params = [{transform_indices = @transform_0, window_bounds = array<i64: 1, 4, 38>}, {pipeline_mode = #tpu.pipeline_mode<synchronous>, transform_indices = @transform_1, window_bounds = array<i64: 8, 128>}, {transform_indices = @transform_2, window_bounds = array<i64: 1, 8, 8>}, {transform_indices = @transform_3, window_bounds = array<i64: 1, 8, 1>}, {transform_indices = @transform_4, window_bounds = array<i64: 1, 8, 1>}]} {
    %c0 = arith.constant 0 : index
    %c0_0 = arith.constant 0 : index
    %c0_1 = arith.constant 0 : index
    %0 = vector.load %arg1[%c0, %c0_0, %c0_1] : memref<1x4x38xbf16, #tpu.memory_space<vmem>>, vector<1x4x38xbf16>
    %1 = vector.shape_cast %0 : vector<1x4x38xbf16> to vector<4x38xbf16>
    %cst = arith.constant 0.000000e+00 : bf16
    %2 = vector.broadcast %cst : bf16 to vector<4x8xbf16>
    %c124 = arith.constant 124 : index
    %c0_2 = arith.constant 0 : index
    %3 = vector.load %arg6[%c124, %c0_2] : memref<128x8xbf16, #tpu.memory_space<vmem>>, vector<4x8xbf16>
    tpu.vector_store %arg6[%c124, %c0_2], %2 {strides = array<i32>} : memref<128x8xbf16, #tpu.memory_space<vmem>>, vector<4x8xbf16>,
    %4 = vector.extract_strided_slice %1 {offsets = [0, 0], sizes = [4, 8], strides = [1, 1]} : vector<4x38xbf16> to vector<4x8xbf16>
    %c0_3 = arith.constant 0 : index
    %c0_4 = arith.constant 0 : index
    %5 = vector.load %arg6[%c0_3, %c0_4] : memref<128x8xbf16, #tpu.memory_space<vmem>>, vector<4x8xbf16>
    tpu.vector_store %arg6[%c0_3, %c0_4], %4 {strides = array<i32>} : memref<128x8xbf16, #tpu.memory_space<vmem>>, vector<4x8xbf16>,
    %6 = vector.extract_strided_slice %1 {offsets = [0, 1], sizes = [4, 8], strides = [1, 1]} : vector<4x38xbf16> to vector<4x8xbf16>
    %c4 = arith.constant 4 : index
    %c0_5 = arith.constant 0 : index
    %7 = vector.load %arg6[%c4, %c0_5] : memref<128x8xbf16, #tpu.memory_space<vmem>>, vector<4x8xbf16>
    tpu.vector_store %arg6[%c4, %c0_5], %6 {strides = array<i32>} : memref<128x8xbf16, #tpu.memory_space<vmem>>, vector<4x8xbf16>,
    %8 = vector.extract_strided_slice %1 {offsets = [0, 2], sizes = [4, 8], strides = [1, 1]} : vector<4x38xbf16> to vector<4x8xbf16>
    %c8 = arith.constant 8 : index
    %c0_6 = arith.constant 0 : index
    %9 = vector.load %arg6[%c8, %c0_6] : memref<128x8xbf16, #tpu.memory_space<vmem>>, vector<4x8xbf16>
    tpu.vector_store %arg6[%c8, %c0_6], %8 {strides = array<i32>} : memref<128x8xbf16, #tpu.memory_space<vmem>>, vector<4x8xbf16>,
    %10 = vector.extract_strided_slice %1 {offsets = [0, 3], sizes = [4, 8], strides = [1, 1]} : vector<4x38xbf16> to vector<4x8xbf16>
    %c12 = arith.constant 12 : index
    %c0_7 = arith.constant 0 : index
    %11 = vector.load %arg6[%c12, %c0_7] : memref<128x8xbf16, #tpu.memory_space<vmem>>, vector<4x8xbf16>
    tpu.vector_store %arg6[%c12, %c0_7], %10 {strides = array<i32>} : memref<128x8xbf16, #tpu.memory_space<vmem>>, vector<4x8xbf16>,
    %12 = vector.extract_strided_slice %1 {offsets = [0, 4], sizes = [4, 8], strides = [1, 1]} : vector<4x38xbf16> to vector<4x8xbf16>
    %c16 = arith.constant 16 : index
    %c0_8 = arith.constant 0 : index
    %13 = vector.load %arg6[%c16, %c0_8] : memref<128x8xbf16, #tpu.memory_space<vmem>>, vector<4x8xbf16>
    tpu.vector_store %arg6[%c16, %c0_8], %12 {strides = array<i32>} : memref<128x8xbf16, #tpu.memory_space<vmem>>, vector<4x8xbf16>,
    %14 = vector.extract_strided_slice %1 {offsets = [0, 5], sizes = [4, 8], strides = [1, 1]} : vector<4x38xbf16> to vector<4x8xbf16>
    %c20 = arith.constant 20 : index
    %c0_9 = arith.constant 0 : index
    %15 = vector.load %arg6[%c20, %c0_9] : memref<128x8xbf16, #tpu.memory_space<vmem>>, vector<4x8xbf16>
    tpu.vector_store %arg6[%c20, %c0_9], %14 {strides = array<i32>} : memref<128x8xbf16, #tpu.memory_space<vmem>>, vector<4x8xbf16>,
    %16 = vector.extract_strided_slice %1 {offsets = [0, 6], sizes = [4, 8], strides = [1, 1]} : vector<4x38xbf16> to vector<4x8xbf16>
    %c24 = arith.constant 24 : index
    %c0_10 = arith.constant 0 : index
    %17 = vector.load %arg6[%c24, %c0_10] : memref<128x8xbf16, #tpu.memory_space<vmem>>, vector<4x8xbf16>
    tpu.vector_store %arg6[%c24, %c0_10], %16 {strides = array<i32>} : memref<128x8xbf16, #tpu.memory_space<vmem>>, vector<4x8xbf16>,
    %18 = vector.extract_strided_slice %1 {offsets = [0, 7], sizes = [4, 8], strides = [1, 1]} : vector<4x38xbf16> to vector<4x8xbf16>
    %c28 = arith.constant 28 : index
    %c0_11 = arith.constant 0 : index
    %19 = vector.load %arg6[%c28, %c0_11] : memref<128x8xbf16, #tpu.memory_space<vmem>>, vector<4x8xbf16>
    tpu.vector_store %arg6[%c28, %c0_11], %18 {strides = array<i32>} : memref<128x8xbf16, #tpu.memory_space<vmem>>, vector<4x8xbf16>,
    %20 = vector.extract_strided_slice %1 {offsets = [0, 8], sizes = [4, 8], strides = [1, 1]} : vector<4x38xbf16> to vector<4x8xbf16>
    %c32 = arith.constant 32 : index
    %c0_12 = arith.constant 0 : index
    %21 = vector.load %arg6[%c32, %c0_12] : memref<128x8xbf16, #tpu.memory_space<vmem>>, vector<4x8xbf16>
    tpu.vector_store %arg6[%c32, %c0_12], %20 {strides = array<i32>} : memref<128x8xbf16, #tpu.memory_space<vmem>>, vector<4x8xbf16>,
    %22 = vector.extract_strided_slice %1 {offsets = [0, 9], sizes = [4, 8], strides = [1, 1]} : vector<4x38xbf16> to vector<4x8xbf16>
    %c36 = arith.constant 36 : index
    %c0_13 = arith.constant 0 : index
    %23 = vector.load %arg6[%c36, %c0_13] : memref<128x8xbf16, #tpu.memory_space<vmem>>, vector<4x8xbf16>
    tpu.vector_store %arg6[%c36, %c0_13], %22 {strides = array<i32>} : memref<128x8xbf16, #tpu.memory_space<vmem>>, vector<4x8xbf16>,
    %24 = vector.extract_strided_slice %1 {offsets = [0, 10], sizes = [4, 8], strides = [1, 1]} : vector<4x38xbf16> to vector<4x8xbf16>
    %c40 = arith.constant 40 : index
    %c0_14 = arith.constant 0 : index
    %25 = vector.load %arg6[%c40, %c0_14] : memref<128x8xbf16, #tpu.memory_space<vmem>>, vector<4x8xbf16>
    tpu.vector_store %arg6[%c40, %c0_14], %24 {strides = array<i32>} : memref<128x8xbf16, #tpu.memory_space<vmem>>, vector<4x8xbf16>,
    %26 = vector.extract_strided_slice %1 {offsets = [0, 11], sizes = [4, 8], strides = [1, 1]} : vector<4x38xbf16> to vector<4x8xbf16>
    %c44 = arith.constant 44 : index
    %c0_15 = arith.constant 0 : index
    %27 = vector.load %arg6[%c44, %c0_15] : memref<128x8xbf16, #tpu.memory_space<vmem>>, vector<4x8xbf16>
    tpu.vector_store %arg6[%c44, %c0_15], %26 {strides = array<i32>} : memref<128x8xbf16, #tpu.memory_space<vmem>>, vector<4x8xbf16>,
    %28 = vector.extract_strided_slice %1 {offsets = [0, 12], sizes = [4, 8], strides = [1, 1]} : vector<4x38xbf16> to vector<4x8xbf16>
    %c48 = arith.constant 48 : index
    %c0_16 = arith.constant 0 : index
    %29 = vector.load %arg6[%c48, %c0_16] : memref<128x8xbf16, #tpu.memory_space<vmem>>, vector<4x8xbf16>
    tpu.vector_store %arg6[%c48, %c0_16], %28 {strides = array<i32>} : memref<128x8xbf16, #tpu.memory_space<vmem>>, vector<4x8xbf16>,
    %30 = vector.extract_strided_slice %1 {offsets = [0, 13], sizes = [4, 8], strides = [1, 1]} : vector<4x38xbf16> to vector<4x8xbf16>
    %c52 = arith.constant 52 : index
    %c0_17 = arith.constant 0 : index
    %31 = vector.load %arg6[%c52, %c0_17] : memref<128x8xbf16, #tpu.memory_space<vmem>>, vector<4x8xbf16>
    tpu.vector_store %arg6[%c52, %c0_17], %30 {strides = array<i32>} : memref<128x8xbf16, #tpu.memory_space<vmem>>, vector<4x8xbf16>,
    %32 = vector.extract_strided_slice %1 {offsets = [0, 14], sizes = [4, 8], strides = [1, 1]} : vector<4x38xbf16> to vector<4x8xbf16>
    %c56 = arith.constant 56 : index
    %c0_18 = arith.constant 0 : index
    %33 = vector.load %arg6[%c56, %c0_18] : memref<128x8xbf16, #tpu.memory_space<vmem>>, vector<4x8xbf16>
    tpu.vector_store %arg6[%c56, %c0_18], %32 {strides = array<i32>} : memref<128x8xbf16, #tpu.memory_space<vmem>>, vector<4x8xbf16>,
    %34 = vector.extract_strided_slice %1 {offsets = [0, 15], sizes = [4, 8], strides = [1, 1]} : vector<4x38xbf16> to vector<4x8xbf16>
    %c60 = arith.constant 60 : index
    %c0_19 = arith.constant 0 : index
    %35 = vector.load %arg6[%c60, %c0_19] : memref<128x8xbf16, #tpu.memory_space<vmem>>, vector<4x8xbf16>
    tpu.vector_store %arg6[%c60, %c0_19], %34 {strides = array<i32>} : memref<128x8xbf16, #tpu.memory_space<vmem>>, vector<4x8xbf16>,
    %36 = vector.extract_strided_slice %1 {offsets = [0, 16], sizes = [4, 8], strides = [1, 1]} : vector<4x38xbf16> to vector<4x8xbf16>
    %c64 = arith.constant 64 : index
    %c0_20 = arith.constant 0 : index
    %37 = vector.load %arg6[%c64, %c0_20] : memref<128x8xbf16, #tpu.memory_space<vmem>>, vector<4x8xbf16>
    tpu.vector_store %arg6[%c64, %c0_20], %36 {strides = array<i32>} : memref<128x8xbf16, #tpu.memory_space<vmem>>, vector<4x8xbf16>,
    %38 = vector.extract_strided_slice %1 {offsets = [0, 17], sizes = [4, 8], strides = [1, 1]} : vector<4x38xbf16> to vector<4x8xbf16>
    %c68 = arith.constant 68 : index
    %c0_21 = arith.constant 0 : index
    %39 = vector.load %arg6[%c68, %c0_21] : memref<128x8xbf16, #tpu.memory_space<vmem>>, vector<4x8xbf16>
    tpu.vector_store %arg6[%c68, %c0_21], %38 {strides = array<i32>} : memref<128x8xbf16, #tpu.memory_space<vmem>>, vector<4x8xbf16>,
    %40 = vector.extract_strided_slice %1 {offsets = [0, 18], sizes = [4, 8], strides = [1, 1]} : vector<4x38xbf16> to vector<4x8xbf16>
    %c72 = arith.constant 72 : index
    %c0_22 = arith.constant 0 : index
    %41 = vector.load %arg6[%c72, %c0_22] : memref<128x8xbf16, #tpu.memory_space<vmem>>, vector<4x8xbf16>
    tpu.vector_store %arg6[%c72, %c0_22], %40 {strides = array<i32>} : memref<128x8xbf16, #tpu.memory_space<vmem>>, vector<4x8xbf16>,
    %42 = vector.extract_strided_slice %1 {offsets = [0, 19], sizes = [4, 8], strides = [1, 1]} : vector<4x38xbf16> to vector<4x8xbf16>
    %c76 = arith.constant 76 : index
    %c0_23 = arith.constant 0 : index
    %43 = vector.load %arg6[%c76, %c0_23] : memref<128x8xbf16, #tpu.memory_space<vmem>>, vector<4x8xbf16>
    tpu.vector_store %arg6[%c76, %c0_23], %42 {strides = array<i32>} : memref<128x8xbf16, #tpu.memory_space<vmem>>, vector<4x8xbf16>,
    %44 = vector.extract_strided_slice %1 {offsets = [0, 20], sizes = [4, 8], strides = [1, 1]} : vector<4x38xbf16> to vector<4x8xbf16>
    %c80 = arith.constant 80 : index
    %c0_24 = arith.constant 0 : index
    %45 = vector.load %arg6[%c80, %c0_24] : memref<128x8xbf16, #tpu.memory_space<vmem>>, vector<4x8xbf16>
    tpu.vector_store %arg6[%c80, %c0_24], %44 {strides = array<i32>} : memref<128x8xbf16, #tpu.memory_space<vmem>>, vector<4x8xbf16>,
    %46 = vector.extract_strided_slice %1 {offsets = [0, 21], sizes = [4, 8], strides = [1, 1]} : vector<4x38xbf16> to vector<4x8xbf16>
    %c84 = arith.constant 84 : index
    %c0_25 = arith.constant 0 : index
    %47 = vector.load %arg6[%c84, %c0_25] : memref<128x8xbf16, #tpu.memory_space<vmem>>, vector<4x8xbf16>
    tpu.vector_store %arg6[%c84, %c0_25], %46 {strides = array<i32>} : memref<128x8xbf16, #tpu.memory_space<vmem>>, vector<4x8xbf16>,
    %48 = vector.extract_strided_slice %1 {offsets = [0, 22], sizes = [4, 8], strides = [1, 1]} : vector<4x38xbf16> to vector<4x8xbf16>
    %c88 = arith.constant 88 : index
    %c0_26 = arith.constant 0 : index
    %49 = vector.load %arg6[%c88, %c0_26] : memref<128x8xbf16, #tpu.memory_space<vmem>>, vector<4x8xbf16>
    tpu.vector_store %arg6[%c88, %c0_26], %48 {strides = array<i32>} : memref<128x8xbf16, #tpu.memory_space<vmem>>, vector<4x8xbf16>,
    %50 = vector.extract_strided_slice %1 {offsets = [0, 23], sizes = [4, 8], strides = [1, 1]} : vector<4x38xbf16> to vector<4x8xbf16>
    %c92 = arith.constant 92 : index
    %c0_27 = arith.constant 0 : index
    %51 = vector.load %arg6[%c92, %c0_27] : memref<128x8xbf16, #tpu.memory_space<vmem>>, vector<4x8xbf16>
    tpu.vector_store %arg6[%c92, %c0_27], %50 {strides = array<i32>} : memref<128x8xbf16, #tpu.memory_space<vmem>>, vector<4x8xbf16>,
    %52 = vector.extract_strided_slice %1 {offsets = [0, 24], sizes = [4, 8], strides = [1, 1]} : vector<4x38xbf16> to vector<4x8xbf16>
    %c96 = arith.constant 96 : index
    %c0_28 = arith.constant 0 : index
    %53 = vector.load %arg6[%c96, %c0_28] : memref<128x8xbf16, #tpu.memory_space<vmem>>, vector<4x8xbf16>
    tpu.vector_store %arg6[%c96, %c0_28], %52 {strides = array<i32>} : memref<128x8xbf16, #tpu.memory_space<vmem>>, vector<4x8xbf16>,
    %54 = vector.extract_strided_slice %1 {offsets = [0, 25], sizes = [4, 8], strides = [1, 1]} : vector<4x38xbf16> to vector<4x8xbf16>
    %c100 = arith.constant 100 : index
    %c0_29 = arith.constant 0 : index
    %55 = vector.load %arg6[%c100, %c0_29] : memref<128x8xbf16, #tpu.memory_space<vmem>>, vector<4x8xbf16>
    tpu.vector_store %arg6[%c100, %c0_29], %54 {strides = array<i32>} : memref<128x8xbf16, #tpu.memory_space<vmem>>, vector<4x8xbf16>,
    %56 = vector.extract_strided_slice %1 {offsets = [0, 26], sizes = [4, 8], strides = [1, 1]} : vector<4x38xbf16> to vector<4x8xbf16>
    %c104 = arith.constant 104 : index
    %c0_30 = arith.constant 0 : index
    %57 = vector.load %arg6[%c104, %c0_30] : memref<128x8xbf16, #tpu.memory_space<vmem>>, vector<4x8xbf16>
    tpu.vector_store %arg6[%c104, %c0_30], %56 {strides = array<i32>} : memref<128x8xbf16, #tpu.memory_space<vmem>>, vector<4x8xbf16>,
    %58 = vector.extract_strided_slice %1 {offsets = [0, 27], sizes = [4, 8], strides = [1, 1]} : vector<4x38xbf16> to vector<4x8xbf16>
    %c108 = arith.constant 108 : index
    %c0_31 = arith.constant 0 : index
    %59 = vector.load %arg6[%c108, %c0_31] : memref<128x8xbf16, #tpu.memory_space<vmem>>, vector<4x8xbf16>
    tpu.vector_store %arg6[%c108, %c0_31], %58 {strides = array<i32>} : memref<128x8xbf16, #tpu.memory_space<vmem>>, vector<4x8xbf16>,
    %60 = vector.extract_strided_slice %1 {offsets = [0, 28], sizes = [4, 8], strides = [1, 1]} : vector<4x38xbf16> to vector<4x8xbf16>
    %c112 = arith.constant 112 : index
    %c0_32 = arith.constant 0 : index
    %61 = vector.load %arg6[%c112, %c0_32] : memref<128x8xbf16, #tpu.memory_space<vmem>>, vector<4x8xbf16>
    tpu.vector_store %arg6[%c112, %c0_32], %60 {strides = array<i32>} : memref<128x8xbf16, #tpu.memory_space<vmem>>, vector<4x8xbf16>,
    %62 = vector.extract_strided_slice %1 {offsets = [0, 29], sizes = [4, 8], strides = [1, 1]} : vector<4x38xbf16> to vector<4x8xbf16>
    %c116 = arith.constant 116 : index
    %c0_33 = arith.constant 0 : index
    %63 = vector.load %arg6[%c116, %c0_33] : memref<128x8xbf16, #tpu.memory_space<vmem>>, vector<4x8xbf16>
    tpu.vector_store %arg6[%c116, %c0_33], %62 {strides = array<i32>} : memref<128x8xbf16, #tpu.memory_space<vmem>>, vector<4x8xbf16>,
    %64 = vector.extract_strided_slice %1 {offsets = [0, 30], sizes = [4, 8], strides = [1, 1]} : vector<4x38xbf16> to vector<4x8xbf16>
    %c120 = arith.constant 120 : index
    %c0_34 = arith.constant 0 : index
    %65 = vector.load %arg6[%c120, %c0_34] : memref<128x8xbf16, #tpu.memory_space<vmem>>, vector<4x8xbf16>
    tpu.vector_store %arg6[%c120, %c0_34], %64 {strides = array<i32>} : memref<128x8xbf16, #tpu.memory_space<vmem>>, vector<4x8xbf16>,
    %c0_35 = arith.constant 0 : index
    %c0_36 = arith.constant 0 : index
    %66 = vector.load %arg2[%c0_35, %c0_36] : memref<8x128xbf16, #tpu.memory_space<vmem>>, vector<8x128xbf16>
    %c0_37 = arith.constant 0 : index
    %c0_38 = arith.constant 0 : index
    %67 = vector.load %arg6[%c0_37, %c0_38] : memref<128x8xbf16, #tpu.memory_space<vmem>>, vector<128x8xbf16>
    %cst_39 = arith.constant dense<0.000000e+00> : vector<8x8xf32>
    %68 = tpu.matmul %66, %67, %cst_39 {dimension_numbers = #tpu.dot_dimension_numbers<[1], [0], [0], [1], [0, 0, 1, 1], [], []>} : vector<8x128xbf16>, vector<128x8xbf16>, vector<8x8xf32> -> vector<8x8xf32>
    %cst_40 = arith.constant dense<0.000000e+00> : vector<8xf32>
    %69 = vector.multi_reduction <add>, %68, %cst_40 [1] : vector<8x8xf32> to vector<8xf32>
    %70 = vector.shape_cast %69 : vector<8xf32> to vector<8x1xf32>
    %c0_41 = arith.constant 0 : index
    %c0_42 = arith.constant 0 : index
    %c0_43 = arith.constant 0 : index
    %71 = vector.load %arg4[%c0_41, %c0_42, %c0_43] : memref<1x8x1xf32, #tpu.memory_space<vmem>>, vector<1x8x1xf32>
    %72 = vector.shape_cast %71 : vector<1x8x1xf32> to vector<8x1xf32>
    %73 = vector.shape_cast %70 : vector<8x1xf32> to vector<1x8x1xf32>
    tpu.vector_store %arg4[%c0_41, %c0_42, %c0_43], %73 {strides = array<i32>} : memref<1x8x1xf32, #tpu.memory_space<vmem>>, vector<1x8x1xf32>,
    %74 = arith.mulf %68, %68 : vector<8x8xf32>
    %cst_44 = arith.constant dense<0.000000e+00> : vector<8xf32>
    %75 = vector.multi_reduction <add>, %74, %cst_44 [1] : vector<8x8xf32> to vector<8xf32>
    %76 = vector.shape_cast %75 : vector<8xf32> to vector<8x1xf32>
    %c0_45 = arith.constant 0 : index
    %c0_46 = arith.constant 0 : index
    %c0_47 = arith.constant 0 : index
    %77 = vector.load %arg5[%c0_45, %c0_46, %c0_47] : memref<1x8x1xf32, #tpu.memory_space<vmem>>, vector<1x8x1xf32>
    %78 = vector.shape_cast %77 : vector<1x8x1xf32> to vector<8x1xf32>
    %79 = vector.shape_cast %76 : vector<8x1xf32> to vector<1x8x1xf32>
    tpu.vector_store %arg5[%c0_45, %c0_46, %c0_47], %79 {strides = array<i32>} : memref<1x8x1xf32, #tpu.memory_space<vmem>>, vector<1x8x1xf32>,
    %80 = arith.truncf %68 : vector<8x8xf32> to vector<8x8xbf16>
    %c0_48 = arith.constant 0 : index
    %c0_49 = arith.constant 0 : index
    %c0_50 = arith.constant 0 : index
    %81 = vector.load %arg3[%c0_48, %c0_49, %c0_50] : memref<1x8x8xbf16, #tpu.memory_space<vmem>>, vector<1x8x8xbf16>
    %82 = vector.shape_cast %81 : vector<1x8x8xbf16> to vector<8x8xbf16>
    %83 = vector.shape_cast %80 : vector<8x8xbf16> to vector<1x8x8xbf16>
    tpu.vector_store %arg3[%c0_48, %c0_49, %c0_50], %83 {strides = array<i32>} : memref<1x8x8xbf16, #tpu.memory_space<vmem>>, vector<1x8x8xbf16>,
    return
  }
  func.func @transform_0(%arg0: i32) -> (i32, i32, i32) {
    %c0_i32 = arith.constant 0 : i32
    %c0_i32_0 = arith.constant 0 : i32
    %c0_i32_1 = arith.constant 0 : i32
    return %arg0, %c0_i32, %c0_i32_0 : i32, i32, i32
  }
  func.func @transform_1(%arg0: i32) -> (i32, i32) {
    %c0_i32 = arith.constant 0 : i32
    %c0_i32_0 = arith.constant 0 : i32
    %c0_i32_1 = arith.constant 0 : i32
    return %c0_i32, %c0_i32_0 : i32, i32
  }
  func.func @transform_2(%arg0: i32) -> (i32, i32, i32) {
    %c0_i32 = arith.constant 0 : i32
    %c0_i32_0 = arith.constant 0 : i32
    %c0_i32_1 = arith.constant 0 : i32
    return %arg0, %c0_i32, %c0_i32_0 : i32, i32, i32
  }
  func.func @transform_3(%arg0: i32) -> (i32, i32, i32) {
    %c0_i32 = arith.constant 0 : i32
    %c0_i32_0 = arith.constant 0 : i32
    %c0_i32_1 = arith.constant 0 : i32
    return %arg0, %c0_i32, %c0_i32_0 : i32, i32, i32
  }
  func.func @transform_4(%arg0: i32) -> (i32, i32, i32) {
    %c0_i32 = arith.constant 0 : i32
    %c0_i32_0 = arith.constant 0 : i32
    %c0_i32_1 = arith.constant 0 : i32
    return %arg0, %c0_i32, %c0_i32_0 : i32, i32, i32
  }
}

module attributes {stable_mosaic.version = 11 : i64} {
  func.func @_bn2_relu_kernel(%arg0: i32, %arg1: memref<1x8x8xbf16, #tpu.memory_space<vmem>>, %arg2: memref<8x1xf32, #tpu.memory_space<vmem>>, %arg3: memref<8x1xf32, #tpu.memory_space<vmem>>, %arg4: memref<1x8x8xf32, #tpu.memory_space<vmem>>) attributes {dimension_semantics = [#tpu.dimension_semantics<parallel>], iteration_bounds = array<i64: 8>, scalar_prefetch = 0 : i64, scratch_operands = 0 : i64, tpu.core_type = #tpu.core_type<tc>, window_params = [{transform_indices = @transform_0, window_bounds = array<i64: 1, 8, 8>}, {pipeline_mode = #tpu.pipeline_mode<synchronous>, transform_indices = @transform_1, window_bounds = array<i64: 8, 1>}, {pipeline_mode = #tpu.pipeline_mode<synchronous>, transform_indices = @transform_2, window_bounds = array<i64: 8, 1>}, {transform_indices = @transform_3, window_bounds = array<i64: 1, 8, 8>}]} {
    %c0 = arith.constant 0 : index
    %c0_0 = arith.constant 0 : index
    %c0_1 = arith.constant 0 : index
    %0 = vector.load %arg1[%c0, %c0_0, %c0_1] : memref<1x8x8xbf16, #tpu.memory_space<vmem>>, vector<1x8x8xbf16>
    %1 = vector.shape_cast %0 : vector<1x8x8xbf16> to vector<8x8xbf16>
    %2 = arith.extf %1 : vector<8x8xbf16> to vector<8x8xf32>
    %c0_2 = arith.constant 0 : index
    %c0_3 = arith.constant 0 : index
    %3 = vector.load %arg2[%c0_2, %c0_3] : memref<8x1xf32, #tpu.memory_space<vmem>>, vector<8x1xf32>
    %4 = vector.broadcast %3 : vector<8x1xf32> to vector<8x8xf32>
    %5 = arith.mulf %2, %4 : vector<8x8xf32>
    %c0_4 = arith.constant 0 : index
    %c0_5 = arith.constant 0 : index
    %6 = vector.load %arg3[%c0_4, %c0_5] : memref<8x1xf32, #tpu.memory_space<vmem>>, vector<8x1xf32>
    %7 = vector.broadcast %6 : vector<8x1xf32> to vector<8x8xf32>
    %8 = arith.addf %5, %7 : vector<8x8xf32>
    %cst = arith.constant 0.000000e+00 : f32
    %9 = vector.broadcast %cst : f32 to vector<8x8xf32>
    %10 = arith.maximumf %8, %9 : vector<8x8xf32>
    %c0_6 = arith.constant 0 : index
    %c0_7 = arith.constant 0 : index
    %c0_8 = arith.constant 0 : index
    %11 = vector.load %arg4[%c0_6, %c0_7, %c0_8] : memref<1x8x8xf32, #tpu.memory_space<vmem>>, vector<1x8x8xf32>
    %12 = vector.shape_cast %11 : vector<1x8x8xf32> to vector<8x8xf32>
    %13 = vector.shape_cast %10 : vector<8x8xf32> to vector<1x8x8xf32>
    tpu.vector_store %arg4[%c0_6, %c0_7, %c0_8], %13 {strides = array<i32>} : memref<1x8x8xf32, #tpu.memory_space<vmem>>, vector<1x8x8xf32>,
    return
  }
  func.func @transform_0(%arg0: i32) -> (i32, i32, i32) {
    %c0_i32 = arith.constant 0 : i32
    %c0_i32_0 = arith.constant 0 : i32
    %c0_i32_1 = arith.constant 0 : i32
    return %arg0, %c0_i32, %c0_i32_0 : i32, i32, i32
  }
  func.func @transform_1(%arg0: i32) -> (i32, i32) {
    %c0_i32 = arith.constant 0 : i32
    %c0_i32_0 = arith.constant 0 : i32
    %c0_i32_1 = arith.constant 0 : i32
    return %c0_i32, %c0_i32_0 : i32, i32
  }
  func.func @transform_2(%arg0: i32) -> (i32, i32) {
    %c0_i32 = arith.constant 0 : i32
    %c0_i32_0 = arith.constant 0 : i32
    %c0_i32_1 = arith.constant 0 : i32
    return %c0_i32, %c0_i32_0 : i32, i32
  }
  func.func @transform_3(%arg0: i32) -> (i32, i32, i32) {
    %c0_i32 = arith.constant 0 : i32
    %c0_i32_0 = arith.constant 0 : i32
    %c0_i32_1 = arith.constant 0 : i32
    return %arg0, %c0_i32, %c0_i32_0 : i32, i32, i32
  }
}

module attributes {stable_mosaic.version = 11 : i64} {
  func.func @_bn1_conv2_kernel(%arg0: i32, %arg1: memref<1x8x8xbf16, #tpu.memory_space<vmem>>, %arg2: memref<8x1xf32, #tpu.memory_space<vmem>>, %arg3: memref<8x1xf32, #tpu.memory_space<vmem>>, %arg4: memref<8x256xbf16, #tpu.memory_space<vmem>>, %arg5: memref<1x8x8xbf16, #tpu.memory_space<vmem>>, %arg6: memref<1x8x1xf32, #tpu.memory_space<vmem>>, %arg7: memref<1x8x1xf32, #tpu.memory_space<vmem>>, %arg8: memref<8x38xbf16, #tpu.memory_space<vmem>>, %arg9: memref<256x8xbf16, #tpu.memory_space<vmem>>) attributes {dimension_semantics = [#tpu.dimension_semantics<parallel>], iteration_bounds = array<i64: 8>, scalar_prefetch = 0 : i64, scratch_operands = 2 : i64, tpu.core_type = #tpu.core_type<tc>, window_params = [{transform_indices = @transform_0, window_bounds = array<i64: 1, 8, 8>}, {pipeline_mode = #tpu.pipeline_mode<synchronous>, transform_indices = @transform_1, window_bounds = array<i64: 8, 1>}, {pipeline_mode = #tpu.pipeline_mode<synchronous>, transform_indices = @transform_2, window_bounds = array<i64: 8, 1>}, {pipeline_mode = #tpu.pipeline_mode<synchronous>, transform_indices = @transform_3, window_bounds = array<i64: 8, 256>}, {transform_indices = @transform_4, window_bounds = array<i64: 1, 8, 8>}, {transform_indices = @transform_5, window_bounds = array<i64: 1, 8, 1>}, {transform_indices = @transform_6, window_bounds = array<i64: 1, 8, 1>}]} {
    %c0 = arith.constant 0 : index
    %c0_0 = arith.constant 0 : index
    %c0_1 = arith.constant 0 : index
    %0 = vector.load %arg1[%c0, %c0_0, %c0_1] : memref<1x8x8xbf16, #tpu.memory_space<vmem>>, vector<1x8x8xbf16>
    %1 = vector.shape_cast %0 : vector<1x8x8xbf16> to vector<8x8xbf16>
    %2 = arith.extf %1 : vector<8x8xbf16> to vector<8x8xf32>
    %c0_2 = arith.constant 0 : index
    %c0_3 = arith.constant 0 : index
    %3 = vector.load %arg2[%c0_2, %c0_3] : memref<8x1xf32, #tpu.memory_space<vmem>>, vector<8x1xf32>
    %4 = vector.broadcast %3 : vector<8x1xf32> to vector<8x8xf32>
    %5 = arith.mulf %2, %4 : vector<8x8xf32>
    %c0_4 = arith.constant 0 : index
    %c0_5 = arith.constant 0 : index
    %6 = vector.load %arg3[%c0_4, %c0_5] : memref<8x1xf32, #tpu.memory_space<vmem>>, vector<8x1xf32>
    %7 = vector.broadcast %6 : vector<8x1xf32> to vector<8x8xf32>
    %8 = arith.addf %5, %7 : vector<8x8xf32>
    %cst = arith.constant 0.000000e+00 : f32
    %9 = vector.broadcast %cst : f32 to vector<8x8xf32>
    %10 = arith.maximumf %8, %9 : vector<8x8xf32>
    %cst_6 = arith.constant 0.000000e+00 : bf16
    %11 = vector.broadcast %cst_6 : bf16 to vector<8x15xbf16>
    %c0_7 = arith.constant 0 : index
    %c0_8 = arith.constant 0 : index
    %12 = vector.load %arg8[%c0_7, %c0_8] : memref<8x38xbf16, #tpu.memory_space<vmem>>, vector<8x15xbf16>
    tpu.vector_store %arg8[%c0_7, %c0_8], %11 {strides = array<i32>} : memref<8x38xbf16, #tpu.memory_space<vmem>>, vector<8x15xbf16>,
    %cst_9 = arith.constant 0.000000e+00 : bf16
    %13 = vector.broadcast %cst_9 : bf16 to vector<8x15xbf16>
    %c0_10 = arith.constant 0 : index
    %c23 = arith.constant 23 : index
    %14 = vector.load %arg8[%c0_10, %c23] : memref<8x38xbf16, #tpu.memory_space<vmem>>, vector<8x15xbf16>
    tpu.vector_store %arg8[%c0_10, %c23], %13 {strides = array<i32>} : memref<8x38xbf16, #tpu.memory_space<vmem>>, vector<8x15xbf16>,
    %15 = arith.truncf %10 : vector<8x8xf32> to vector<8x8xbf16>
    %c0_11 = arith.constant 0 : index
    %c15 = arith.constant 15 : index
    %16 = vector.load %arg8[%c0_11, %c15] : memref<8x38xbf16, #tpu.memory_space<vmem>>, vector<8x8xbf16>
    tpu.vector_store %arg8[%c0_11, %c15], %15 {strides = array<i32>} : memref<8x38xbf16, #tpu.memory_space<vmem>>, vector<8x8xbf16>,
    %c0_12 = arith.constant 0 : index
    %c0_13 = arith.constant 0 : index
    %17 = vector.load %arg8[%c0_12, %c0_13] : memref<8x38xbf16, #tpu.memory_space<vmem>>, vector<8x38xbf16>
    %cst_14 = arith.constant 0.000000e+00 : bf16
    %18 = vector.broadcast %cst_14 : bf16 to vector<8x8xbf16>
    %c248 = arith.constant 248 : index
    %c0_15 = arith.constant 0 : index
    %19 = vector.load %arg9[%c248, %c0_15] : memref<256x8xbf16, #tpu.memory_space<vmem>>, vector<8x8xbf16>
    tpu.vector_store %arg9[%c248, %c0_15], %18 {strides = array<i32>} : memref<256x8xbf16, #tpu.memory_space<vmem>>, vector<8x8xbf16>,
    %20 = vector.extract_strided_slice %17 {offsets = [0, 0], sizes = [8, 8], strides = [1, 1]} : vector<8x38xbf16> to vector<8x8xbf16>
    %c0_16 = arith.constant 0 : index
    %c0_17 = arith.constant 0 : index
    %21 = vector.load %arg9[%c0_16, %c0_17] : memref<256x8xbf16, #tpu.memory_space<vmem>>, vector<8x8xbf16>
    tpu.vector_store %arg9[%c0_16, %c0_17], %20 {strides = array<i32>} : memref<256x8xbf16, #tpu.memory_space<vmem>>, vector<8x8xbf16>,
    %22 = vector.extract_strided_slice %17 {offsets = [0, 1], sizes = [8, 8], strides = [1, 1]} : vector<8x38xbf16> to vector<8x8xbf16>
    %c8 = arith.constant 8 : index
    %c0_18 = arith.constant 0 : index
    %23 = vector.load %arg9[%c8, %c0_18] : memref<256x8xbf16, #tpu.memory_space<vmem>>, vector<8x8xbf16>
    tpu.vector_store %arg9[%c8, %c0_18], %22 {strides = array<i32>} : memref<256x8xbf16, #tpu.memory_space<vmem>>, vector<8x8xbf16>,
    %24 = vector.extract_strided_slice %17 {offsets = [0, 2], sizes = [8, 8], strides = [1, 1]} : vector<8x38xbf16> to vector<8x8xbf16>
    %c16 = arith.constant 16 : index
    %c0_19 = arith.constant 0 : index
    %25 = vector.load %arg9[%c16, %c0_19] : memref<256x8xbf16, #tpu.memory_space<vmem>>, vector<8x8xbf16>
    tpu.vector_store %arg9[%c16, %c0_19], %24 {strides = array<i32>} : memref<256x8xbf16, #tpu.memory_space<vmem>>, vector<8x8xbf16>,
    %26 = vector.extract_strided_slice %17 {offsets = [0, 3], sizes = [8, 8], strides = [1, 1]} : vector<8x38xbf16> to vector<8x8xbf16>
    %c24 = arith.constant 24 : index
    %c0_20 = arith.constant 0 : index
    %27 = vector.load %arg9[%c24, %c0_20] : memref<256x8xbf16, #tpu.memory_space<vmem>>, vector<8x8xbf16>
    tpu.vector_store %arg9[%c24, %c0_20], %26 {strides = array<i32>} : memref<256x8xbf16, #tpu.memory_space<vmem>>, vector<8x8xbf16>,
    %28 = vector.extract_strided_slice %17 {offsets = [0, 4], sizes = [8, 8], strides = [1, 1]} : vector<8x38xbf16> to vector<8x8xbf16>
    %c32 = arith.constant 32 : index
    %c0_21 = arith.constant 0 : index
    %29 = vector.load %arg9[%c32, %c0_21] : memref<256x8xbf16, #tpu.memory_space<vmem>>, vector<8x8xbf16>
    tpu.vector_store %arg9[%c32, %c0_21], %28 {strides = array<i32>} : memref<256x8xbf16, #tpu.memory_space<vmem>>, vector<8x8xbf16>,
    %30 = vector.extract_strided_slice %17 {offsets = [0, 5], sizes = [8, 8], strides = [1, 1]} : vector<8x38xbf16> to vector<8x8xbf16>
    %c40 = arith.constant 40 : index
    %c0_22 = arith.constant 0 : index
    %31 = vector.load %arg9[%c40, %c0_22] : memref<256x8xbf16, #tpu.memory_space<vmem>>, vector<8x8xbf16>
    tpu.vector_store %arg9[%c40, %c0_22], %30 {strides = array<i32>} : memref<256x8xbf16, #tpu.memory_space<vmem>>, vector<8x8xbf16>,
    %32 = vector.extract_strided_slice %17 {offsets = [0, 6], sizes = [8, 8], strides = [1, 1]} : vector<8x38xbf16> to vector<8x8xbf16>
    %c48 = arith.constant 48 : index
    %c0_23 = arith.constant 0 : index
    %33 = vector.load %arg9[%c48, %c0_23] : memref<256x8xbf16, #tpu.memory_space<vmem>>, vector<8x8xbf16>
    tpu.vector_store %arg9[%c48, %c0_23], %32 {strides = array<i32>} : memref<256x8xbf16, #tpu.memory_space<vmem>>, vector<8x8xbf16>,
    %34 = vector.extract_strided_slice %17 {offsets = [0, 7], sizes = [8, 8], strides = [1, 1]} : vector<8x38xbf16> to vector<8x8xbf16>
    %c56 = arith.constant 56 : index
    %c0_24 = arith.constant 0 : index
    %35 = vector.load %arg9[%c56, %c0_24] : memref<256x8xbf16, #tpu.memory_space<vmem>>, vector<8x8xbf16>
    tpu.vector_store %arg9[%c56, %c0_24], %34 {strides = array<i32>} : memref<256x8xbf16, #tpu.memory_space<vmem>>, vector<8x8xbf16>,
    %36 = vector.extract_strided_slice %17 {offsets = [0, 8], sizes = [8, 8], strides = [1, 1]} : vector<8x38xbf16> to vector<8x8xbf16>
    %c64 = arith.constant 64 : index
    %c0_25 = arith.constant 0 : index
    %37 = vector.load %arg9[%c64, %c0_25] : memref<256x8xbf16, #tpu.memory_space<vmem>>, vector<8x8xbf16>
    tpu.vector_store %arg9[%c64, %c0_25], %36 {strides = array<i32>} : memref<256x8xbf16, #tpu.memory_space<vmem>>, vector<8x8xbf16>,
    %38 = vector.extract_strided_slice %17 {offsets = [0, 9], sizes = [8, 8], strides = [1, 1]} : vector<8x38xbf16> to vector<8x8xbf16>
    %c72 = arith.constant 72 : index
    %c0_26 = arith.constant 0 : index
    %39 = vector.load %arg9[%c72, %c0_26] : memref<256x8xbf16, #tpu.memory_space<vmem>>, vector<8x8xbf16>
    tpu.vector_store %arg9[%c72, %c0_26], %38 {strides = array<i32>} : memref<256x8xbf16, #tpu.memory_space<vmem>>, vector<8x8xbf16>,
    %40 = vector.extract_strided_slice %17 {offsets = [0, 10], sizes = [8, 8], strides = [1, 1]} : vector<8x38xbf16> to vector<8x8xbf16>
    %c80 = arith.constant 80 : index
    %c0_27 = arith.constant 0 : index
    %41 = vector.load %arg9[%c80, %c0_27] : memref<256x8xbf16, #tpu.memory_space<vmem>>, vector<8x8xbf16>
    tpu.vector_store %arg9[%c80, %c0_27], %40 {strides = array<i32>} : memref<256x8xbf16, #tpu.memory_space<vmem>>, vector<8x8xbf16>,
    %42 = vector.extract_strided_slice %17 {offsets = [0, 11], sizes = [8, 8], strides = [1, 1]} : vector<8x38xbf16> to vector<8x8xbf16>
    %c88 = arith.constant 88 : index
    %c0_28 = arith.constant 0 : index
    %43 = vector.load %arg9[%c88, %c0_28] : memref<256x8xbf16, #tpu.memory_space<vmem>>, vector<8x8xbf16>
    tpu.vector_store %arg9[%c88, %c0_28], %42 {strides = array<i32>} : memref<256x8xbf16, #tpu.memory_space<vmem>>, vector<8x8xbf16>,
    %44 = vector.extract_strided_slice %17 {offsets = [0, 12], sizes = [8, 8], strides = [1, 1]} : vector<8x38xbf16> to vector<8x8xbf16>
    %c96 = arith.constant 96 : index
    %c0_29 = arith.constant 0 : index
    %45 = vector.load %arg9[%c96, %c0_29] : memref<256x8xbf16, #tpu.memory_space<vmem>>, vector<8x8xbf16>
    tpu.vector_store %arg9[%c96, %c0_29], %44 {strides = array<i32>} : memref<256x8xbf16, #tpu.memory_space<vmem>>, vector<8x8xbf16>,
    %46 = vector.extract_strided_slice %17 {offsets = [0, 13], sizes = [8, 8], strides = [1, 1]} : vector<8x38xbf16> to vector<8x8xbf16>
    %c104 = arith.constant 104 : index
    %c0_30 = arith.constant 0 : index
    %47 = vector.load %arg9[%c104, %c0_30] : memref<256x8xbf16, #tpu.memory_space<vmem>>, vector<8x8xbf16>
    tpu.vector_store %arg9[%c104, %c0_30], %46 {strides = array<i32>} : memref<256x8xbf16, #tpu.memory_space<vmem>>, vector<8x8xbf16>,
    %48 = vector.extract_strided_slice %17 {offsets = [0, 14], sizes = [8, 8], strides = [1, 1]} : vector<8x38xbf16> to vector<8x8xbf16>
    %c112 = arith.constant 112 : index
    %c0_31 = arith.constant 0 : index
    %49 = vector.load %arg9[%c112, %c0_31] : memref<256x8xbf16, #tpu.memory_space<vmem>>, vector<8x8xbf16>
    tpu.vector_store %arg9[%c112, %c0_31], %48 {strides = array<i32>} : memref<256x8xbf16, #tpu.memory_space<vmem>>, vector<8x8xbf16>,
    %50 = vector.extract_strided_slice %17 {offsets = [0, 15], sizes = [8, 8], strides = [1, 1]} : vector<8x38xbf16> to vector<8x8xbf16>
    %c120 = arith.constant 120 : index
    %c0_32 = arith.constant 0 : index
    %51 = vector.load %arg9[%c120, %c0_32] : memref<256x8xbf16, #tpu.memory_space<vmem>>, vector<8x8xbf16>
    tpu.vector_store %arg9[%c120, %c0_32], %50 {strides = array<i32>} : memref<256x8xbf16, #tpu.memory_space<vmem>>, vector<8x8xbf16>,
    %52 = vector.extract_strided_slice %17 {offsets = [0, 16], sizes = [8, 8], strides = [1, 1]} : vector<8x38xbf16> to vector<8x8xbf16>
    %c128 = arith.constant 128 : index
    %c0_33 = arith.constant 0 : index
    %53 = vector.load %arg9[%c128, %c0_33] : memref<256x8xbf16, #tpu.memory_space<vmem>>, vector<8x8xbf16>
    tpu.vector_store %arg9[%c128, %c0_33], %52 {strides = array<i32>} : memref<256x8xbf16, #tpu.memory_space<vmem>>, vector<8x8xbf16>,
    %54 = vector.extract_strided_slice %17 {offsets = [0, 17], sizes = [8, 8], strides = [1, 1]} : vector<8x38xbf16> to vector<8x8xbf16>
    %c136 = arith.constant 136 : index
    %c0_34 = arith.constant 0 : index
    %55 = vector.load %arg9[%c136, %c0_34] : memref<256x8xbf16, #tpu.memory_space<vmem>>, vector<8x8xbf16>
    tpu.vector_store %arg9[%c136, %c0_34], %54 {strides = array<i32>} : memref<256x8xbf16, #tpu.memory_space<vmem>>, vector<8x8xbf16>,
    %56 = vector.extract_strided_slice %17 {offsets = [0, 18], sizes = [8, 8], strides = [1, 1]} : vector<8x38xbf16> to vector<8x8xbf16>
    %c144 = arith.constant 144 : index
    %c0_35 = arith.constant 0 : index
    %57 = vector.load %arg9[%c144, %c0_35] : memref<256x8xbf16, #tpu.memory_space<vmem>>, vector<8x8xbf16>
    tpu.vector_store %arg9[%c144, %c0_35], %56 {strides = array<i32>} : memref<256x8xbf16, #tpu.memory_space<vmem>>, vector<8x8xbf16>,
    %58 = vector.extract_strided_slice %17 {offsets = [0, 19], sizes = [8, 8], strides = [1, 1]} : vector<8x38xbf16> to vector<8x8xbf16>
    %c152 = arith.constant 152 : index
    %c0_36 = arith.constant 0 : index
    %59 = vector.load %arg9[%c152, %c0_36] : memref<256x8xbf16, #tpu.memory_space<vmem>>, vector<8x8xbf16>
    tpu.vector_store %arg9[%c152, %c0_36], %58 {strides = array<i32>} : memref<256x8xbf16, #tpu.memory_space<vmem>>, vector<8x8xbf16>,
    %60 = vector.extract_strided_slice %17 {offsets = [0, 20], sizes = [8, 8], strides = [1, 1]} : vector<8x38xbf16> to vector<8x8xbf16>
    %c160 = arith.constant 160 : index
    %c0_37 = arith.constant 0 : index
    %61 = vector.load %arg9[%c160, %c0_37] : memref<256x8xbf16, #tpu.memory_space<vmem>>, vector<8x8xbf16>
    tpu.vector_store %arg9[%c160, %c0_37], %60 {strides = array<i32>} : memref<256x8xbf16, #tpu.memory_space<vmem>>, vector<8x8xbf16>,
    %62 = vector.extract_strided_slice %17 {offsets = [0, 21], sizes = [8, 8], strides = [1, 1]} : vector<8x38xbf16> to vector<8x8xbf16>
    %c168 = arith.constant 168 : index
    %c0_38 = arith.constant 0 : index
    %63 = vector.load %arg9[%c168, %c0_38] : memref<256x8xbf16, #tpu.memory_space<vmem>>, vector<8x8xbf16>
    tpu.vector_store %arg9[%c168, %c0_38], %62 {strides = array<i32>} : memref<256x8xbf16, #tpu.memory_space<vmem>>, vector<8x8xbf16>,
    %64 = vector.extract_strided_slice %17 {offsets = [0, 22], sizes = [8, 8], strides = [1, 1]} : vector<8x38xbf16> to vector<8x8xbf16>
    %c176 = arith.constant 176 : index
    %c0_39 = arith.constant 0 : index
    %65 = vector.load %arg9[%c176, %c0_39] : memref<256x8xbf16, #tpu.memory_space<vmem>>, vector<8x8xbf16>
    tpu.vector_store %arg9[%c176, %c0_39], %64 {strides = array<i32>} : memref<256x8xbf16, #tpu.memory_space<vmem>>, vector<8x8xbf16>,
    %66 = vector.extract_strided_slice %17 {offsets = [0, 23], sizes = [8, 8], strides = [1, 1]} : vector<8x38xbf16> to vector<8x8xbf16>
    %c184 = arith.constant 184 : index
    %c0_40 = arith.constant 0 : index
    %67 = vector.load %arg9[%c184, %c0_40] : memref<256x8xbf16, #tpu.memory_space<vmem>>, vector<8x8xbf16>
    tpu.vector_store %arg9[%c184, %c0_40], %66 {strides = array<i32>} : memref<256x8xbf16, #tpu.memory_space<vmem>>, vector<8x8xbf16>,
    %68 = vector.extract_strided_slice %17 {offsets = [0, 24], sizes = [8, 8], strides = [1, 1]} : vector<8x38xbf16> to vector<8x8xbf16>
    %c192 = arith.constant 192 : index
    %c0_41 = arith.constant 0 : index
    %69 = vector.load %arg9[%c192, %c0_41] : memref<256x8xbf16, #tpu.memory_space<vmem>>, vector<8x8xbf16>
    tpu.vector_store %arg9[%c192, %c0_41], %68 {strides = array<i32>} : memref<256x8xbf16, #tpu.memory_space<vmem>>, vector<8x8xbf16>,
    %70 = vector.extract_strided_slice %17 {offsets = [0, 25], sizes = [8, 8], strides = [1, 1]} : vector<8x38xbf16> to vector<8x8xbf16>
    %c200 = arith.constant 200 : index
    %c0_42 = arith.constant 0 : index
    %71 = vector.load %arg9[%c200, %c0_42] : memref<256x8xbf16, #tpu.memory_space<vmem>>, vector<8x8xbf16>
    tpu.vector_store %arg9[%c200, %c0_42], %70 {strides = array<i32>} : memref<256x8xbf16, #tpu.memory_space<vmem>>, vector<8x8xbf16>,
    %72 = vector.extract_strided_slice %17 {offsets = [0, 26], sizes = [8, 8], strides = [1, 1]} : vector<8x38xbf16> to vector<8x8xbf16>
    %c208 = arith.constant 208 : index
    %c0_43 = arith.constant 0 : index
    %73 = vector.load %arg9[%c208, %c0_43] : memref<256x8xbf16, #tpu.memory_space<vmem>>, vector<8x8xbf16>
    tpu.vector_store %arg9[%c208, %c0_43], %72 {strides = array<i32>} : memref<256x8xbf16, #tpu.memory_space<vmem>>, vector<8x8xbf16>,
    %74 = vector.extract_strided_slice %17 {offsets = [0, 27], sizes = [8, 8], strides = [1, 1]} : vector<8x38xbf16> to vector<8x8xbf16>
    %c216 = arith.constant 216 : index
    %c0_44 = arith.constant 0 : index
    %75 = vector.load %arg9[%c216, %c0_44] : memref<256x8xbf16, #tpu.memory_space<vmem>>, vector<8x8xbf16>
    tpu.vector_store %arg9[%c216, %c0_44], %74 {strides = array<i32>} : memref<256x8xbf16, #tpu.memory_space<vmem>>, vector<8x8xbf16>,
    %76 = vector.extract_strided_slice %17 {offsets = [0, 28], sizes = [8, 8], strides = [1, 1]} : vector<8x38xbf16> to vector<8x8xbf16>
    %c224 = arith.constant 224 : index
    %c0_45 = arith.constant 0 : index
    %77 = vector.load %arg9[%c224, %c0_45] : memref<256x8xbf16, #tpu.memory_space<vmem>>, vector<8x8xbf16>
    tpu.vector_store %arg9[%c224, %c0_45], %76 {strides = array<i32>} : memref<256x8xbf16, #tpu.memory_space<vmem>>, vector<8x8xbf16>,
    %78 = vector.extract_strided_slice %17 {offsets = [0, 29], sizes = [8, 8], strides = [1, 1]} : vector<8x38xbf16> to vector<8x8xbf16>
    %c232 = arith.constant 232 : index
    %c0_46 = arith.constant 0 : index
    %79 = vector.load %arg9[%c232, %c0_46] : memref<256x8xbf16, #tpu.memory_space<vmem>>, vector<8x8xbf16>
    tpu.vector_store %arg9[%c232, %c0_46], %78 {strides = array<i32>} : memref<256x8xbf16, #tpu.memory_space<vmem>>, vector<8x8xbf16>,
    %80 = vector.extract_strided_slice %17 {offsets = [0, 30], sizes = [8, 8], strides = [1, 1]} : vector<8x38xbf16> to vector<8x8xbf16>
    %c240 = arith.constant 240 : index
    %c0_47 = arith.constant 0 : index
    %81 = vector.load %arg9[%c240, %c0_47] : memref<256x8xbf16, #tpu.memory_space<vmem>>, vector<8x8xbf16>
    tpu.vector_store %arg9[%c240, %c0_47], %80 {strides = array<i32>} : memref<256x8xbf16, #tpu.memory_space<vmem>>, vector<8x8xbf16>,
    %c0_48 = arith.constant 0 : index
    %c0_49 = arith.constant 0 : index
    %82 = vector.load %arg4[%c0_48, %c0_49] : memref<8x256xbf16, #tpu.memory_space<vmem>>, vector<8x256xbf16>
    %c0_50 = arith.constant 0 : index
    %c0_51 = arith.constant 0 : index
    %83 = vector.load %arg9[%c0_50, %c0_51] : memref<256x8xbf16, #tpu.memory_space<vmem>>, vector<256x8xbf16>
    %cst_52 = arith.constant dense<0.000000e+00> : vector<8x8xf32>
    %84 = tpu.matmul %82, %83, %cst_52 {dimension_numbers = #tpu.dot_dimension_numbers<[1], [0], [0], [1], [0, 0, 1, 1], [], []>} : vector<8x256xbf16>, vector<256x8xbf16>, vector<8x8xf32> -> vector<8x8xf32>
    %cst_53 = arith.constant dense<0.000000e+00> : vector<8xf32>
    %85 = vector.multi_reduction <add>, %84, %cst_53 [1] : vector<8x8xf32> to vector<8xf32>
    %86 = vector.shape_cast %85 : vector<8xf32> to vector<8x1xf32>
    %c0_54 = arith.constant 0 : index
    %c0_55 = arith.constant 0 : index
    %c0_56 = arith.constant 0 : index
    %87 = vector.load %arg6[%c0_54, %c0_55, %c0_56] : memref<1x8x1xf32, #tpu.memory_space<vmem>>, vector<1x8x1xf32>
    %88 = vector.shape_cast %87 : vector<1x8x1xf32> to vector<8x1xf32>
    %89 = vector.shape_cast %86 : vector<8x1xf32> to vector<1x8x1xf32>
    tpu.vector_store %arg6[%c0_54, %c0_55, %c0_56], %89 {strides = array<i32>} : memref<1x8x1xf32, #tpu.memory_space<vmem>>, vector<1x8x1xf32>,
    %90 = arith.mulf %84, %84 : vector<8x8xf32>
    %cst_57 = arith.constant dense<0.000000e+00> : vector<8xf32>
    %91 = vector.multi_reduction <add>, %90, %cst_57 [1] : vector<8x8xf32> to vector<8xf32>
    %92 = vector.shape_cast %91 : vector<8xf32> to vector<8x1xf32>
    %c0_58 = arith.constant 0 : index
    %c0_59 = arith.constant 0 : index
    %c0_60 = arith.constant 0 : index
    %93 = vector.load %arg7[%c0_58, %c0_59, %c0_60] : memref<1x8x1xf32, #tpu.memory_space<vmem>>, vector<1x8x1xf32>
    %94 = vector.shape_cast %93 : vector<1x8x1xf32> to vector<8x1xf32>
    %95 = vector.shape_cast %92 : vector<8x1xf32> to vector<1x8x1xf32>
    tpu.vector_store %arg7[%c0_58, %c0_59, %c0_60], %95 {strides = array<i32>} : memref<1x8x1xf32, #tpu.memory_space<vmem>>, vector<1x8x1xf32>,
    %96 = arith.truncf %84 : vector<8x8xf32> to vector<8x8xbf16>
    %c0_61 = arith.constant 0 : index
    %c0_62 = arith.constant 0 : index
    %c0_63 = arith.constant 0 : index
    %97 = vector.load %arg5[%c0_61, %c0_62, %c0_63] : memref<1x8x8xbf16, #tpu.memory_space<vmem>>, vector<1x8x8xbf16>
    %98 = vector.shape_cast %97 : vector<1x8x8xbf16> to vector<8x8xbf16>
    %99 = vector.shape_cast %96 : vector<8x8xbf16> to vector<1x8x8xbf16>
    tpu.vector_store %arg5[%c0_61, %c0_62, %c0_63], %99 {strides = array<i32>} : memref<1x8x8xbf16, #tpu.memory_space<vmem>>, vector<1x8x8xbf16>,
    return
  }
  func.func @transform_0(%arg0: i32) -> (i32, i32, i32) {
    %c0_i32 = arith.constant 0 : i32
    %c0_i32_0 = arith.constant 0 : i32
    %c0_i32_1 = arith.constant 0 : i32
    return %arg0, %c0_i32, %c0_i32_0 : i32, i32, i32
  }
  func.func @transform_1(%arg0: i32) -> (i32, i32) {
    %c0_i32 = arith.constant 0 : i32
    %c0_i32_0 = arith.constant 0 : i32
    %c0_i32_1 = arith.constant 0 : i32
    return %c0_i32, %c0_i32_0 : i32, i32
  }
  func.func @transform_2(%arg0: i32) -> (i32, i32) {
    %c0_i32 = arith.constant 0 : i32
    %c0_i32_0 = arith.constant 0 : i32
    %c0_i32_1 = arith.constant 0 : i32
    return %c0_i32, %c0_i32_0 : i32, i32
  }
  func.func @transform_3(%arg0: i32) -> (i32, i32) {
    %c0_i32 = arith.constant 0 : i32
    %c0_i32_0 = arith.constant 0 : i32
    %c0_i32_1 = arith.constant 0 : i32
    return %c0_i32, %c0_i32_0 : i32, i32
  }
  func.func @transform_4(%arg0: i32) -> (i32, i32, i32) {
    %c0_i32 = arith.constant 0 : i32
    %c0_i32_0 = arith.constant 0 : i32
    %c0_i32_1 = arith.constant 0 : i32
    return %arg0, %c0_i32, %c0_i32_0 : i32, i32, i32
  }
  func.func @transform_5(%arg0: i32) -> (i32, i32, i32) {
    %c0_i32 = arith.constant 0 : i32
    %c0_i32_0 = arith.constant 0 : i32
    %c0_i32_1 = arith.constant 0 : i32
    return %arg0, %c0_i32, %c0_i32_0 : i32, i32, i32
  }
  func.func @transform_6(%arg0: i32) -> (i32, i32, i32) {
    %c0_i32 = arith.constant 0 : i32
    %c0_i32_0 = arith.constant 0 : i32
    %c0_i32_1 = arith.constant 0 : i32
    return %arg0, %c0_i32, %c0_i32_0 : i32, i32, i32
  }
}

</mosaic_0001>

<bundles_post_ra>
// kernel: down_forward.5
= control target key start
LH: loop header
LB: loop body
LE: loop exit
PB: predicated region body
PF: predicated region fallthrough
CT: control target
= control target key end

     0   :  { %8 = vsyncpa [#allocation3], 0  ;;  %s501_s0 = inlined_call_operand.vmem [shape: bf16[8,8,8], index: 0, kind: input, shape index: {}]   ;;  %s502_s1 = inlined_call_operand.vmem [shape: f32[8,1], index: 1, kind: input, shape index: {}]   ;;  %s503_s2 = inlined_call_operand.vmem [shape: f32[8,1], index: 2, kind: input, shape index: {}]   ;;  %s504_s3 = inlined_call_operand.hbm [shape: f32[8,8,8], index: 3, kind: output, shape index: {}]  }
   0x1   :  { %10 = vsyncpa [#allocation3 + $0x1], 0  ;;  %s395_s12 = smov 0   ;;  %s397_s13 = smov 0  }
   0x2   :  { %s399_s14 = smov 0   ;;  %s401_s15 = smov 0  }
   0x3 LB: > { %s416_s16 = sadd.s32 4294967295, %s371_s15   ;;  %s258_s17 = sadd.s32 4294967294, %s371_s15   ;;  %s371_s15 = sphi %s401_s15, %s510_s15   ;;  %s367_s14 = sphi %s399_s14, %s509_s14   ;;  %s363_s13 = sphi %s397_s13, %s508_s13   ;;  %s359_s12 = sphi %s395_s12, %s507_s12  }
   0x4   : > { %s420_s18 = sadd.s32 1, %s371_s15   ;;  %s91_s19 = sadd.s32 1, %s367_s14 }
   0x5   : > { %s88_s20 = ssub.s32 %s371_s15, %s420_s18  ;;  %p101_p0 = scmp.ne.s32.totalorder %s367_s14, %s363_s13 }
   0x6   : > { %p89_p1 = scmp.eq.s32.totalorder %s88_s20, 0  ;;  %p102_p2 = scmp.eq.s32.totalorder %s416_s16, 7 }
   0x7   : > { %p107_p3 = scmp.ne.s32.totalorder %s363_s13, %s359_s12  ;;  %p108_p4 = scmp.eq.s32.totalorder %s258_s17, 7 }
   0x8   : > { %s431_s21 = scalar_select %p89_p1, %s367_s14, %s91_s19  }
   0x9   : > { %p433_p5 = por %p102_p2, %p101_p0  ;;  %p437_p6 = por %p108_p4, %p107_p3 }
   0xa   : > { %p261_p7 = scmp.ge.s32.totalorder %s371_s15, 1  ;;  %p139_p8 = scmp.lt.s32.totalorder %s371_s15, 9 }
   0xc   : > { %p140_p9 = pnand %p261_p7, %p139_p8 }
   0xd   : > { %v168_v0 = vld [vmem:[%s502_s1] sm:$0xff] (!%p140_p9)  ;;  %v373_v1 = vmov (!%p140_p9), 0   ;;  %p162_p10 = scmp.lt.s32.totalorder (!%p140_p9), %s416_s16, 7  ;;  %s159_s6 = sand.u32 (!%p140_p9), 1, %s363_s13   ;;  %vm183_vm0 = vcmask (!%p140_p9), 64512  }
   0xe   : > { %143 = sbr.rel (%p140_p9) target bundleno = 165 (0xa5), region = 32  ;;  %308 = vset.pattern.permute.xlu0 (!%p140_p9), %v373_v1  ;;  %v175_v2 = vld [vmem:[%s503_s2] sm:$0xff] (!%p140_p9)  ;;  %s262_s7 = sshll.u32 (!%p140_p9), %s159_s6, 3 }
   0xf   : > { %171 = vperm.xlu0 (!%p140_p9), %308, %v168_v0   ;;  %s265_s8 = sshll.u32 (!%p140_p9), %s416_s16, 7  ;;  %s161_s9 = scalar_lea.vmem (!%p140_p9), [#allocation2], %s262_s7 }
  0x10   : > { %s199_s10 = sshll.u32 (!%p140_p9), %s161_s9, 4  ;;  %s459_s19 = scalar_lea.hbm (!%p140_p9), %s504_s3, %s265_s8  ;;  %s461_s10 = int_to_ptr.vmem [resolvable:$true] %s199_s10 }
  0x11   : > { %s186_s20 = scalar_lea.sflag (!%p140_p9), [#allocation3], %s159_s6  ;;  %s309_s24 = scalar_lea.vmem (!%p140_p9), %s461_s10, 128 }
  0x12   : > { %p310_p11 = scmp.ne.s32.totalorder (!%p140_p9), %s461_s10, %s309_s24 }
  0x13   : > { %178 = vperm.xlu0 (!%p140_p9), %308, %v175_v2  }
  0x14   : > { %p311_p12 = pnand (!%p140_p9), %p310_p11, %p433_p5 }
  0x15   : > { %s163_s28 = scalar_select %p162_p10, %s416_s16, 7 }
  0x16   : > { %p312_p13 = pneg %p311_p12  ;;  %s374_s16 = smov [#allocation2]  }
  0x17   : > { %s263_s29 = sshll.u32 %s163_s28, 2  ;;  %s313_s25 = sshll.u32 %s374_s16, 4  ;;  %s314_s25 = int_to_ptr.vmem [resolvable:$false] %s313_s25 }
  0x18   : > { %s165_s5 = scalar_lea.vmem %s501_s0, %s263_s29  ;;  %s315_s26 = scalar_lea.vmem %s314_s25, 256 }
  0x19   : > { %v166_v3 = vld [vmem:[%s165_s5] sm:$0xf]  ;;  %p316_p0 = scmp.lt.s32.totalorder %s461_s10, %s314_s25  ;;  %p317_p1 = scmp.lt.s32.totalorder %s315_s26, %s309_s24 }
  0x1a   : > { %v167_v4 = vunpack.c.l.bf16 %v166_v3 }
  0x1b   : > { %p318_p2 = por %p317_p1, %p316_p0 }
  0x1d   : > { %p319_p3 = pnand %p318_p2, %p312_p13 }
  0x8e   : > { %v172_v5 = vpop.permute.xlu0 %171 }
  0x8f   : > { %v174_v6 = vmul.f32 %v172_v5, %v167_v4 }
  0x92   : > { %v179_v7 = vpop.permute.xlu0 %178 }
  0x93   : > { %v181_v8 = vadd.f32 %v179_v7, %v174_v6 }
  0x95   : > { %v182_v9 = vmax.f32 %v181_v8, 0.0 }
  0x97   : > { %184 = vst.msk [vmem:[%s161_s9] sm:$0xff] %vm183_vm0, %v182_v9 }
  0x98   : > { %322 = shalt.err (!%p319_p3)
}
  0x99   : > { %s323_s27 = scalar_lea.hbm %s459_s19, 128  ;;  %s327_s30 = scalar_lea.hbm %s504_s3, 1024 }
  0x9a   : > { %p324_p4 = scmp.ne.s32.totalorder %s459_s19, %s323_s27  ;;  %p328_p9 = scmp.lt.u32.totalorder %s459_s19, %s504_s3 }
  0x9b   : > { %p329_p10 = scmp.lt.u32.totalorder %s327_s30, %s323_s27  ;;  %p331_p12 = scmp.lt.u32.totalorder %s323_s27, %s459_s19 }
  0x9c   : > { %p325_p7 = pnand %p324_p4, %p433_p5 }
  0x9d   : > { %p330_p11 = por %p329_p10, %p328_p9 }
  0x9e   : > { %p326_p8 = pneg %p325_p7 }
  0x9f   : > { %p332_p13 = por %p331_p12, %p330_p11 }
  0xa1   : > { %p333_p0 = pnand %p332_p13, %p326_p8 }
  0xa3   : > { %336 = shalt.err (!%p333_p0)
}
  0xa4   : > { %268 = dma.vmem_to_hbm [thread:$0]  (%p433_p5), %s461_s10, 128, %s459_s19, %s186_s20  }
  0xa5 PF: > { %p274_p1 = scmp.ge.s32.totalorder %s371_s15, 2  ;;  %s211_s6 = sand.u32 1, %s359_s12  }
  0xa6   : > { %s212_s7 = scalar_lea.sflag [#allocation3], %s211_s6 }
  0xa7   : > { %p271_p2 = pnand %p274_p1, %p437_p6 }
  0xa9   : > { %354 = dma.done.wait (!%p271_p2), %s212_s7, 128  }
  0xaa   : > { %356 = vsyncadd (!%p271_p2), %s212_s7, 4294967168  ;;  %p13_p3 = scmp.ge.s32.totalorder %s420_s18, 10   ;;  %s507_s12 = smov %s363_s13 }
  0xab   : > { %s508_s13 = smov %s367_s14  ;;  %s509_s14 = smov %s431_s21 }
  0xac   : > { %s510_s15 = smov %s420_s18  ;;  %15 = sbr.rel (!%p13_p3) target bundleno = 3 (0x3), region = 67 }
  0xb3   :  { %217 = vsyncpa [#allocation3], 1 }
  0xb4   :  { %219 = vsyncpa [#allocation3 + $0x1], 1 }

// kernel: down_forward.3
= control target key start
LH: loop header
LB: loop body
LE: loop exit
PB: predicated region body
PF: predicated region fallthrough
CT: control target
= control target key end

     0   :  { %s688_s15 = smov 0   ;;  %s772_s0 = inlined_call_operand.vmem [shape: bf16[8,4,38], index: 0, kind: input, shape index: {}]   ;;  %s773_s1 = inlined_call_operand.vmem [shape: bf16[8,128], index: 1, kind: input, shape index: {}]   ;;  %s774_s2 = inlined_call_operand.vmem [shape: bf16[8,8,8], index: 2, kind: output, shape index: {0}]   ;;  %s775_s3 = inlined_call_operand.vmem [shape: f32[8,8,1], index: 3, kind: output, shape index: {1}]   ;;  %s776_s4 = inlined_call_operand.vmem [shape: f32[8,8,1], index: 4, kind: output, shape index: {2}]  }
   0x1 LB: > { %s538_s16 = sadd.s32 4294967295, %s627_s15   ;;  %p542_p0 = scmp.ge.s32.totalorder %s627_s15, 1  ;;  %s627_s15 = sphi %s688_s15, %s15_s15  }
   0x2   : > { %p166_p1 = scmp.lt.s32.totalorder %s627_s15, 9 }
   0x4   : > { %p167_p2 = pnand %p542_p0, %p166_p1 }
   0x5   : > { %p198_p3 = scmp.lt.s32.totalorder (!%p167_p2), %s538_s16, 7  ;;  %v225_v0 = vlaneseq (!%p167_p2)  ;;  %v629_v1 = vmov (!%p167_p2), 1983009808   ;;  %vm218_vm0 = vcmask (!%p167_p2), 58368   ;;  %vm216_vm1 = vcmask (!%p167_p2), 64518   ;;  %s631_s21 = smov (!%p167_p2), 124  }
   0x6   : > { %170 = sbr.rel (%p167_p2) target bundleno = 561 (0x231), region = 28  ;;  %v223_v2 = vunpack.c.l.s4 (!%p167_p2), %v629_v1  ;;  %v630_v9 = vmov (!%p167_p2), 0   ;;  %s632_s22 = smov (!%p167_p2), 127   ;;  %v635_v12 = vmov (!%p167_p2), 0.0   ;;  %vm660_vm2 = vmmov (!%p167_p2), 0  }
   0x7   : > { %v226_v3 = vshrl.u32 (!%p167_p2), %v225_v0, 7  ;;  %217 = vst.msk [vmem:[#allocation2 + $0x38] sm:$0xc0] (!%p167_p2), %vm216_vm1, %v630_v9  ;;  %s633_s23 = smov (!%p167_p2), 122   ;;  %s634_s24 = smov (!%p167_p2), 126   ;;  %558 = vmatprep.subr.bf16.mxu0 (!%p167_p2), %v635_v12  ;;  %574 = vmatprep.mubr.msk.bf16.mxu0 (!%p167_p2), %vm660_vm2, %v635_v12  ;;  %vm239_vm3 = vcmask (!%p167_p2), 60418  }
   0x8   : > { %v224_v4 = vunpack.c.0.s8 (!%p167_p2), %v223_v2  ;;  %s636_s25 = smov (!%p167_p2), 120   ;;  %s637_s26 = smov (!%p167_p2), 123   ;;  %vm245_vm4 = vcmask (!%p167_p2), 62468   ;;  %v360_v52 = vld [vmem:[%s773_s1] sm:$0xf] (!%p167_p2)  ;;  %vm409_vm5 = vcmask (!%p167_p2), 64512  }
   0x9   : > { %s638_s27 = smov (!%p167_p2), 125   ;;  %s639_s28 = smov (!%p167_p2), 121   ;;  %vm421_vm6 = vcmask (!%p167_p2), 60416   ;;  %vm413_vm7 = vcmask (!%p167_p2), 7168  }
   0xa   : > { %v227_v5 = vsub.s32 (!%p167_p2), %v224_v4, %v226_v3  ;;  %s640_s29 = smov (!%p167_p2), 118   ;;  %s641_s30 = smov (!%p167_p2), 119  }
   0xb   : > { %s642_s5 = smov (!%p167_p2), 116   ;;  %s643_s6 = smov (!%p167_p2), 117  }
   0xc   : > { %s644_s7 = smov (!%p167_p2), 114   ;;  %s645_s8 = smov (!%p167_p2), 115  }
   0xd   : > { %s778_s16 = smov (!%p198_p3, %s538_s16), 7  ;;  %s646_s9 = smov 112  }
   0xe   : > { %s543_s17 = sshll.u32 %s778_s16, 1  ;;  %s647_s10 = smov 113  }
   0xf   : > { %s201_s20 = scalar_lea.vmem %s772_s0, %s543_s17  ;;  %s648_s11 = smov 110  }
  0x10   : > { %v215_v6 = vld [vmem:[%s201_s20] sm:$0x3]  ;;  %s649_s12 = smov 111   ;;  %s650_s13 = smov 108  }
  0x11   : > { %v235_v7 = vrot.slane %v215_v6, %v227_v5  ;;  %v221_v8 = vcombine.low %v215_v6, %v215_v6  ;;  %219 = vst.msk [vmem:[#allocation2] sm:$0x3] %vm218_vm0, %v215_v6  ;;  %s651_s14 = smov 109   ;;  %s652_s17 = smov 106  }
  0x12   : > { %s653_s18 = smov 107   ;;  %s654_s19 = smov 104  }
  0x13   : > { %252 = vrot.lane.b32.xlu1 %v235_v7, %s631_s21  ;;  %v704_v10 = vrot.slane %v221_v8, %v227_v5  ;;  %v241_v11 = vcombine.low %v235_v7, %v235_v7  ;;  %s655_s20 = smov 105   ;;  %s656_s21 = smov 102  }
  0x15   : > { %236 = vrot.lane.b32.xlu0 %v704_v10, %s632_s22  ;;  %v247_v13 = vcombine.low %v704_v10, %v704_v10  ;;  %s657_s22 = smov 103  }
  0x17   : > { %260 = vrot.lane.b32.xlu1 %v241_v11, %s633_s23  ;;  %s658_s23 = smov 100  }
  0x19   : > { %242 = vrot.lane.b32.xlu0 %v241_v11, %s634_s24  ;;  %s659_s24 = smov 101  }
  0x1b   : > { %268 = vrot.lane.b32.xlu1 %v235_v7, %s636_s25  ;;  %s661_s25 = smov 98  }
  0x1d   : > { %256 = vrot.lane.b32.xlu0 %v704_v10, %s637_s26  ;;  %s662_s26 = smov 99  }
  0x1f   : > { %248 = vrot.lane.b32.xlu1 %v247_v13, %s638_s27 }
  0x21   : > { %264 = vrot.lane.b32.xlu0 %v247_v13, %s639_s28 }
  0x23   : > { %276 = vrot.lane.b32.xlu1 %v241_v11, %s640_s29  ;;  %s544_s29 = sshll.u32 %s778_s16, 2 }
  0x25   : > { %272 = vrot.lane.b32.xlu0 %v704_v10, %s641_s30 }
  0x27   : > { %284 = vrot.lane.b32.xlu1 %v235_v7, %s642_s5 }
  0x29   : > { %280 = vrot.lane.b32.xlu0 %v247_v13, %s643_s6  ;;  %s205_s6 = scalar_lea.vmem %s774_s2, %s544_s29 }
  0x2b   : > { %292 = vrot.lane.b32.xlu1 %v241_v11, %s644_s7  ;;  %s545_s7 = sshll.u32 %s778_s16, 3 }
  0x2d   : > { %288 = vrot.lane.b32.xlu0 %v704_v10, %s645_s8 }
  0x2f   : > { %300 = vrot.lane.b32.xlu1 %v235_v7, %s646_s9 }
  0x31   : > { %296 = vrot.lane.b32.xlu0 %v247_v13, %s647_s10  ;;  %s209_s10 = scalar_lea.vmem %s775_s3, %s545_s7 }
  0x33   : > { %308 = vrot.lane.b32.xlu1 %v241_v11, %s648_s11 }
  0x35   : > { %304 = vrot.lane.b32.xlu0 %v704_v10, %s649_s12 }
  0x37   : > { %316 = vrot.lane.b32.xlu1 %v235_v7, %s650_s13  ;;  %s213_s13 = scalar_lea.vmem %s776_s4, %s545_s7 }
  0x39   : > { %312 = vrot.lane.b32.xlu0 %v247_v13, %s651_s14 }
  0x3b   : > { %324 = vrot.lane.b32.xlu1 %v241_v11, %s652_s17 }
  0x3d   : > { %320 = vrot.lane.b32.xlu0 %v704_v10, %s653_s18 }
  0x3f   : > { %332 = vrot.lane.b32.xlu1 %v235_v7, %s654_s19 }
  0x41   : > { %328 = vrot.lane.b32.xlu0 %v247_v13, %s655_s20 }
  0x43   : > { %340 = vrot.lane.b32.xlu1 %v241_v11, %s656_s21 }
  0x45   : > { %336 = vrot.lane.b32.xlu0 %v704_v10, %s657_s22 }
  0x47   : > { %348 = vrot.lane.b32.xlu1 %v235_v7, %s658_s23 }
  0x49   : > { %344 = vrot.lane.b32.xlu0 %v247_v13, %s659_s24 }
  0x4b   : > { %356 = vrot.lane.b32.xlu1 %v241_v11, %s661_s25 }
  0x4d   : > { %352 = vrot.lane.b32.xlu0 %v704_v10, %s662_s26 }
  0x85   : > { %v253_v14 = vpop.permute.xlu1 %252 }
  0x86   : > { %255 = vst.msk [vmem:[#allocation2 + $0x8] sm:$0x3] %vm218_vm0, %v253_v14 }
  0x87   : > { %v237_v15 = vpop.permute.xlu0 %236 }
  0x88   : > { %240 = vst.msk [vmem:[#allocation2] sm:$0xc] %vm239_vm3, %v237_v15 }
  0x89   : > { %v261_v16 = vpop.permute.xlu1 %260 }
  0x8a   : > { %263 = vst.msk [vmem:[#allocation2 + $0x8] sm:$0x30] %vm245_vm4, %v261_v16 }
  0x8b   : > { %v243_v17 = vpop.permute.xlu0 %242 }
  0x8c   : > { %246 = vst.msk [vmem:[#allocation2] sm:$0x30] %vm245_vm4, %v243_v17 }
  0x8d   : > { %v269_v18 = vpop.permute.xlu1 %268 }
  0x8e   : > { %271 = vst.msk [vmem:[#allocation2 + $0x10] sm:$0x3] %vm218_vm0, %v269_v18 }
  0x8f   : > { %v257_v19 = vpop.permute.xlu0 %256 }
  0x90   : > { %259 = vst.msk [vmem:[#allocation2 + $0x8] sm:$0xc] %vm239_vm3, %v257_v19 }
  0x91   : > { %v249_v20 = vpop.permute.xlu1 %248 }
  0x92   : > { %251 = vst.msk [vmem:[#allocation2] sm:$0xc0] %vm216_vm1, %v249_v20 }
  0x93   : > { %v265_v21 = vpop.permute.xlu0 %264 }
  0x94   : > { %267 = vst.msk [vmem:[#allocation2 + $0x8] sm:$0xc0] %vm216_vm1, %v265_v21 }
  0x95   : > { %v277_v22 = vpop.permute.xlu1 %276 }
  0x96   : > { %279 = vst.msk [vmem:[#allocation2 + $0x10] sm:$0x30] %vm245_vm4, %v277_v22 }
  0x97   : > { %v273_v23 = vpop.permute.xlu0 %272 }
  0x98   : > { %275 = vst.msk [vmem:[#allocation2 + $0x10] sm:$0xc] %vm239_vm3, %v273_v23 }
  0x99   : > { %v361_v24 = vld [vmem:[#allocation2] sm:$0xff]  ;;  %v285_v25 = vpop.permute.xlu1 %284 }
  0x9a   : > { %559 = vmatpush3.bf16.msra.mxu0 %v361_v24  ;;  %287 = vst.msk [vmem:[#allocation2 + $0x18] sm:$0x3] %vm218_vm0, %v285_v25 }
  0x9b   : > { %v281_v26 = vpop.permute.xlu0 %280  ;;  %560 = vmatprep.subr.bf16.mxu0 %v635_v12  ;;  %v362_v27 = vld [vmem:[#allocation2 + $0x8] sm:$0xff] }
  0x9c   : > { %283 = vst.msk [vmem:[#allocation2 + $0x10] sm:$0xc0] %vm216_vm1, %v281_v26 }
  0x9d   : > { %v293_v28 = vpop.permute.xlu1 %292 }
  0x9e   : > { %561 = vmatpush3.bf16.msra.mxu0 %v362_v27  ;;  %295 = vst.msk [vmem:[#allocation2 + $0x18] sm:$0x30] %vm245_vm4, %v293_v28 }
  0x9f   : > { %v289_v29 = vpop.permute.xlu0 %288  ;;  %562 = vmatprep.subr.bf16.mxu0 %v635_v12 }
  0xa0   : > { %291 = vst.msk [vmem:[#allocation2 + $0x18] sm:$0xc] %vm239_vm3, %v289_v29 }
  0xa1   : > { %v301_v30 = vpop.permute.xlu1 %300 }
  0xa2   : > { %303 = vst.msk [vmem:[#allocation2 + $0x20] sm:$0x3] %vm218_vm0, %v301_v30 }
  0xa3   : > { %v297_v31 = vpop.permute.xlu0 %296  ;;  %v363_v32 = vld [vmem:[#allocation2 + $0x10] sm:$0xff] }
  0xa4   : > { %299 = vst.msk [vmem:[#allocation2 + $0x18] sm:$0xc0] %vm216_vm1, %v297_v31  ;;  %563 = vmatpush3.bf16.msra.mxu0 %v363_v32 }
  0xa5   : > { %v309_v33 = vpop.permute.xlu1 %308  ;;  %564 = vmatprep.subr.bf16.mxu0 %v635_v12 }
  0xa6   : > { %311 = vst.msk [vmem:[#allocation2 + $0x20] sm:$0x30] %vm245_vm4, %v309_v33 }
  0xa7   : > { %v305_v34 = vpop.permute.xlu0 %304 }
  0xa8   : > { %307 = vst.msk [vmem:[#allocation2 + $0x20] sm:$0xc] %vm239_vm3, %v305_v34 }
  0xa9   : > { %v317_v35 = vpop.permute.xlu1 %316 }
  0xaa   : > { %319 = vst.msk [vmem:[#allocation2 + $0x28] sm:$0x3] %vm218_vm0, %v317_v35 }
  0xab   : > { %v313_v36 = vpop.permute.xlu0 %312  ;;  %v364_v37 = vld [vmem:[#allocation2 + $0x18] sm:$0xff] }
  0xac   : > { %315 = vst.msk [vmem:[#allocation2 + $0x20] sm:$0xc0] %vm216_vm1, %v313_v36  ;;  %565 = vmatpush3.bf16.msra.mxu0 %v364_v37 }
  0xad   : > { %v325_v38 = vpop.permute.xlu1 %324  ;;  %566 = vmatprep.subr.bf16.mxu0 %v635_v12 }
  0xae   : > { %327 = vst.msk [vmem:[#allocation2 + $0x28] sm:$0x30] %vm245_vm4, %v325_v38 }
  0xaf   : > { %v321_v39 = vpop.permute.xlu0 %320 }
  0xb0   : > { %323 = vst.msk [vmem:[#allocation2 + $0x28] sm:$0xc] %vm239_vm3, %v321_v39 }
  0xb1   : > { %v333_v40 = vpop.permute.xlu1 %332 }
  0xb2   : > { %335 = vst.msk [vmem:[#allocation2 + $0x30] sm:$0x3] %vm218_vm0, %v333_v40 }
  0xb3   : > { %v329_v41 = vpop.permute.xlu0 %328  ;;  %v365_v42 = vld [vmem:[#allocation2 + $0x20] sm:$0xff] }
  0xb4   : > { %331 = vst.msk [vmem:[#allocation2 + $0x28] sm:$0xc0] %vm216_vm1, %v329_v41  ;;  %567 = vmatpush3.bf16.msra.mxu0 %v365_v42 }
  0xb5   : > { %v341_v43 = vpop.permute.xlu1 %340  ;;  %568 = vmatprep.subr.bf16.mxu0 %v635_v12 }
  0xb6   : > { %343 = vst.msk [vmem:[#allocation2 + $0x30] sm:$0x30] %vm245_vm4, %v341_v43 }
  0xb7   : > { %v337_v44 = vpop.permute.xlu0 %336 }
  0xb8   : > { %339 = vst.msk [vmem:[#allocation2 + $0x30] sm:$0xc] %vm239_vm3, %v337_v44 }
  0xb9   : > { %v349_v45 = vpop.permute.xlu1 %348 }
  0xba   : > { %351 = vst.msk [vmem:[#allocation2 + $0x38] sm:$0x3] %vm218_vm0, %v349_v45 }
  0xbb   : > { %v345_v46 = vpop.permute.xlu0 %344  ;;  %v366_v47 = vld [vmem:[#allocation2 + $0x28] sm:$0xff] }
  0xbc   : > { %347 = vst.msk [vmem:[#allocation2 + $0x30] sm:$0xc0] %vm216_vm1, %v345_v46  ;;  %569 = vmatpush3.bf16.msra.mxu0 %v366_v47 }
  0xbd   : > { %v357_v48 = vpop.permute.xlu1 %356  ;;  %570 = vmatprep.subr.bf16.mxu0 %v635_v12 }
  0xbe   : > { %359 = vst.msk [vmem:[#allocation2 + $0x38] sm:$0x30] %vm245_vm4, %v357_v48 }
  0xbf   : > { %v353_v49 = vpop.permute.xlu0 %352 }
  0xc0   : > { %355 = vst.msk [vmem:[#allocation2 + $0x38] sm:$0xc] %vm239_vm3, %v353_v49 }
  0xc3   : > { %v367_v50 = vld [vmem:[#allocation2 + $0x30] sm:$0xff] }
  0xc4   : > { %571 = vmatpush3.bf16.msra.mxu0 %v367_v50 }
  0xc5   : > { %572 = vmatprep.subr.bf16.mxu0 %v635_v12 }
  0xc7   : > { %v368_v51 = vld [vmem:[#allocation2 + $0x38] sm:$0xff] }
  0xc8   : > { %573 = vmatpush3.bf16.msra.mxu0 %v368_v51 }
  0xcb   : > { %575 = vmatmul.mubr.bf16.vlgmr.msra.gmra.mrb[0].mxu0 %v360_v52 }
 0x19e   : > { %v403_v53 = vpop.f32.mrb[0].mxu0 }
 0x19f   : > { %v420_v54 = vpack.c.bf16 %v403_v53, %v403_v53  ;;  %v576_v55 = vpop.f32.mrb[1].mxu0  ;;  %v410_v56 = vsel %vm409_vm5, %v403_v53, 0.0  ;;  %v415_v57 = vmul.f32 %v403_v53, %v403_v53 }
 0x1a0   : > { %411 = vadd.xlane.f32.xlu0 %v410_v56  ;;  %v406_v58 = vpop.f32.mrb[2].mxu0 }
 0x1a1   : > { %422 = vst.msk [vmem:[%s205_s6] sm:$0xf] %vm421_vm6, %v420_v54  ;;  %v577_v59 = vpop.f32.mrb[3].mxu0  ;;  %v416_v60 = vsel %vm409_vm5, %v415_v57, 0.0 }
 0x1a2   : > { %417 = vadd.xlane.f32.xlu1 %v416_v60 }
 0x22d   : > { %v412_v61 = vpop.xlane.xlu0 %411 }
 0x22e   : > { %414 = vst.msk [vmem:[%s209_s10] sm:$0xff] %vm413_vm7, %v412_v61 }
 0x22f   : > { %v418_v62 = vpop.xlane.xlu1 %417 }
 0x230   : > { %419 = vst.msk [vmem:[%s213_s13] sm:$0xff] %vm413_vm7, %v418_v62 }
 0x231 PF: > { %s15_s15 = sadd.s32 1, %s627_s15  }
 0x232   : > { %p12_p4 = scmp.ge.s32.totalorder %s15_s15, 10  }
 0x234   :  { %14 = sbr.rel (!%p12_p4) target bundleno = 1 (0x1), region = 82 }

// kernel: down_forward.4
= control target key start
LH: loop header
LB: loop body
LE: loop exit
PB: predicated region body
PF: predicated region fallthrough
CT: control target
= control target key end

     0   :  { %s776_s21 = smov 0   ;;  %s887_s0 = inlined_call_operand.vmem [shape: bf16[8,8,8], index: 0, kind: input, shape index: {}]   ;;  %s888_s1 = inlined_call_operand.vmem [shape: f32[8,1], index: 1, kind: input, shape index: {}]   ;;  %s889_s2 = inlined_call_operand.vmem [shape: f32[8,1], index: 2, kind: input, shape index: {}]   ;;  %s890_s3 = inlined_call_operand.vmem [shape: bf16[8,256], index: 3, kind: input, shape index: {}]   ;;  %s891_s4 = inlined_call_operand.vmem [shape: bf16[8,8,8], index: 4, kind: output, shape index: {0}]   ;;  %s892_s5 = inlined_call_operand.vmem [shape: f32[8,8,1], index: 5, kind: output, shape index: {1}]   ;;  %s893_s6 = inlined_call_operand.vmem [shape: f32[8,8,1], index: 6, kind: output, shape index: {2}]  }
   0x1 LB: > { %s619_s22 = sadd.s32 4294967295, %s707_s21   ;;  %p623_p0 = scmp.ge.s32.totalorder %s707_s21, 1  ;;  %s707_s21 = sphi %s776_s21, %s17_s21  }
   0x2   : > { %p216_p1 = scmp.lt.s32.totalorder %s707_s21, 9 }
   0x4   : > { %p217_p2 = pnand %p623_p0, %p216_p1 }
   0x5   : > { %vm300_vm0 = vcmask (!%p217_p2), 64516   ;;  %v271_v0 = vld [vmem:[%s888_s1] sm:$0xff] (!%p217_p2)  ;;  %v709_v1 = vmov (!%p217_p2), 0   ;;  %vm286_vm1 = vcmask (!%p217_p2), 117760   ;;  %vm288_vm2 = vcmask (!%p217_p2), 306360   ;;  %p252_p3 = scmp.lt.s32.totalorder (!%p217_p2), %s619_s22, 7 }
   0x6   : > { %220 = sbr.rel (%p217_p2) target bundleno = 814 (0x32e), region = 36  ;;  %697 = vset.pattern.permute.xlu0 (!%p217_p2), %v709_v1  ;;  %301 = vst.msk [vmem:[#allocation3 + $0x78] sm:$0xf0] (!%p217_p2), %vm300_vm0, %v709_v1  ;;  %v278_v2 = vld [vmem:[%s889_s2] sm:$0xff] (!%p217_p2)  ;;  %s710_s7 = smov (!%p217_p2), 15   ;;  %vm297_vm3 = vcmask (!%p217_p2), 183416  }
   0x7   : > { %274 = vperm.xlu0 (!%p217_p2), %697, %v271_v0   ;;  %287 = vst.msk [vmem:[#allocation2] sm:$0xf] (!%p217_p2), %vm286_vm1, %v709_v1  ;;  %vm302_vm4 = vcmask (!%p217_p2), 60416   ;;  %s711_s8 = smov (!%p217_p2), 111   ;;  %s712_s9 = smov (!%p217_p2), 112   ;;  %v831_v14 = vld [vmem:[%s890_s3] sm:$0xff] (!%p217_p2) }
   0x8   : > { %289 = vst.msk [vmem:[#allocation2] sm:$0xf] (!%p217_p2), %vm288_vm2, %v709_v1  ;;  %s713_s10 = smov (!%p217_p2), 110   ;;  %s714_s11 = smov (!%p217_p2), 127   ;;  %v631_v15 = vcombine.high (!%p217_p2), %v831_v14, %v831_v14  ;;  %v630_v62 = vcombine.low (!%p217_p2), %v831_v14, %v831_v14  ;;  %vm491_vm5 = vcmask (!%p217_p2), 64512   ;;  %vm495_vm6 = vcmask (!%p217_p2), 7168  }
   0x9   : > { %s715_s12 = smov (!%p217_p2), 126   ;;  %s716_s13 = smov (!%p217_p2), 109  }
   0xa   : > { %s717_s14 = smov (!%p217_p2), 108   ;;  %s718_s15 = smov (!%p217_p2), 125   ;;  %483 = vmatprep.mubr.bf16.mxu0 (!%p217_p2), %v631_v15 }
   0xb   : > { %281 = vperm.xlu0 (!%p217_p2), %697, %v278_v2   ;;  %s719_s16 = smov (!%p217_p2), 124   ;;  %s720_s17 = smov (!%p217_p2), 107  }
   0xc   : > { %s721_s18 = smov (!%p217_p2), 106   ;;  %s722_s19 = smov (!%p217_p2), 123  }
   0xd   : > { %s895_s22 = smov (!%p252_p3, %s619_s22), 7  ;;  %s723_s20 = smov 122  }
   0xe   : > { %s624_s27 = sshll.u32 %s895_s22, 2  ;;  %s724_s23 = smov 105  }
   0xf   : > { %s255_s30 = scalar_lea.vmem %s887_s0, %s624_s27  ;;  %s725_s24 = smov 104  }
  0x10   : > { %v269_v3 = vld [vmem:[%s255_s30] sm:$0xf]  ;;  %s726_s25 = smov 121   ;;  %s727_s26 = smov 120  }
  0x11   : > { %v270_v4 = vunpack.c.l.bf16 %v269_v3  ;;  %s728_s28 = smov 103   ;;  %s729_s29 = smov 102  }
  0x12   : > { %s730_s30 = smov 119  }
  0x86   : > { %v275_v5 = vpop.permute.xlu0 %274 }
  0x87   : > { %v277_v6 = vmul.f32 %v275_v5, %v270_v4 }
  0x8a   : > { %v282_v7 = vpop.permute.xlu0 %281 }
  0x8b   : > { %v284_v8 = vadd.f32 %v282_v7, %v277_v6 }
  0x8d   : > { %v285_v9 = vmax.f32 %v284_v8, 0.0 }
  0x8f   : > { %v634_v10 = vpack.c.bf16 %v285_v9, %v285_v9 }
  0x91   : > { %294 = vrot.lane.b32.xlu1 %v634_v10, %s710_s7  ;;  %s731_s7 = smov 118  }
 0x103   : > { %v295_v11 = vpop.permute.xlu1 %294 }
 0x104   : > { %298 = vst.msk [vmem:[#allocation2] sm:$0xf] %vm297_vm3, %v295_v11 }
 0x10b   : > { %v299_v12 = vld [vmem:[#allocation2] sm:$0xf] }
 0x10c   : > { %v799_v13 = vcombine.low %v299_v12, %v299_v12  ;;  %303 = vst.msk [vmem:[#allocation3] sm:$0xf] %vm302_vm4, %v299_v12 }
 0x10e   : > { %371 = vrot.lane.b32.xlu0 %v799_v13, %s711_s8  ;;  %367 = vrot.lane.b32.xlu1 %v799_v13, %s712_s9  ;;  %s732_s8 = smov 101   ;;  %s733_s9 = smov 100  }
 0x112   : > { %375 = vrot.lane.b32.xlu0 %v799_v13, %s713_s10  ;;  %307 = vrot.lane.b32.xlu1 %v799_v13, %s714_s11  ;;  %s734_s10 = smov 117   ;;  %s735_s11 = smov 116  }
 0x116   : > { %311 = vrot.lane.b32.xlu0 %v799_v13, %s715_s12  ;;  %379 = vrot.lane.b32.xlu1 %v799_v13, %s716_s13  ;;  %s736_s12 = smov 99  }
 0x11a   : > { %383 = vrot.lane.b32.xlu0 %v799_v13, %s717_s14  ;;  %315 = vrot.lane.b32.xlu1 %v799_v13, %s718_s15  ;;  %s737_s15 = smov 98  }
 0x11e   : > { %319 = vrot.lane.b32.xlu0 %v799_v13, %s719_s16  ;;  %387 = vrot.lane.b32.xlu1 %v799_v13, %s720_s17  ;;  %s738_s16 = smov 115   ;;  %s739_s17 = smov 113  }
 0x122   : > { %391 = vrot.lane.b32.xlu0 %v799_v13, %s721_s18  ;;  %323 = vrot.lane.b32.xlu1 %v799_v13, %s722_s19  ;;  %s740_s18 = smov 114  }
 0x126   : > { %327 = vrot.lane.b32.xlu0 %v799_v13, %s723_s20  ;;  %395 = vrot.lane.b32.xlu1 %v799_v13, %s724_s23  ;;  %s259_s23 = scalar_lea.vmem %s891_s4, %s624_s27 }
 0x12a   : > { %399 = vrot.lane.b32.xlu0 %v799_v13, %s725_s24  ;;  %331 = vrot.lane.b32.xlu1 %v799_v13, %s726_s25  ;;  %s626_s24 = sshll.u32 %s895_s22, 3 }
 0x12b   : > { %s267_s27 = scalar_lea.vmem %s893_s6, %s626_s24 }
 0x12e   : > { %335 = vrot.lane.b32.xlu0 %v799_v13, %s727_s26  ;;  %403 = vrot.lane.b32.xlu1 %v799_v13, %s728_s28  ;;  %s263_s28 = scalar_lea.vmem %s892_s5, %s626_s24 }
 0x132   : > { %407 = vrot.lane.b32.xlu0 %v799_v13, %s729_s29  ;;  %339 = vrot.lane.b32.xlu1 %v799_v13, %s730_s30 }
 0x136   : > { %343 = vrot.lane.b32.xlu0 %v799_v13, %s731_s7  ;;  %411 = vrot.lane.b32.xlu1 %v799_v13, %s732_s8 }
 0x13a   : > { %415 = vrot.lane.b32.xlu0 %v799_v13, %s733_s9  ;;  %347 = vrot.lane.b32.xlu1 %v799_v13, %s734_s10 }
 0x13e   : > { %351 = vrot.lane.b32.xlu0 %v799_v13, %s735_s11  ;;  %419 = vrot.lane.b32.xlu1 %v799_v13, %s736_s12 }
 0x142   : > { %423 = vrot.lane.b32.xlu0 %v799_v13, %s737_s15  ;;  %355 = vrot.lane.b32.xlu1 %v799_v13, %s738_s16 }
 0x146   : > { %363 = vrot.lane.b32.xlu0 %v799_v13, %s739_s17  ;;  %359 = vrot.lane.b32.xlu1 %v799_v13, %s740_s18 }
 0x180   : > { %v372_v16 = vpop.permute.xlu0 %371  ;;  %v368_v17 = vpop.permute.xlu1 %367 }
 0x181   : > { %374 = vst.msk [vmem:[#allocation3 + $0x40] sm:$0xf0] %vm300_vm0, %v372_v16 }
 0x182   : > { %370 = vst.msk [vmem:[#allocation3 + $0x40] sm:$0xf] %vm302_vm4, %v368_v17 }
 0x184   : > { %v376_v18 = vpop.permute.xlu0 %375  ;;  %v308_v19 = vpop.permute.xlu1 %307 }
 0x185   : > { %378 = vst.msk [vmem:[#allocation3 + $0x48] sm:$0xf] %vm302_vm4, %v376_v18 }
 0x186   : > { %310 = vst.msk [vmem:[#allocation3] sm:$0xf0] %vm300_vm0, %v308_v19 }
 0x188   : > { %v312_v20 = vpop.permute.xlu0 %311  ;;  %v380_v21 = vpop.permute.xlu1 %379 }
 0x189   : > { %v436_v22 = vld [vmem:[#allocation3 + $0x40] sm:$0xff]  ;;  %314 = vst.msk [vmem:[#allocation3 + $0x8] sm:$0xf] %vm302_vm4, %v312_v20 }
 0x18a   : > { %382 = vst.msk [vmem:[#allocation3 + $0x48] sm:$0xf0] %vm300_vm0, %v380_v21  ;;  %635 = vmatprep.subr.bf16.mxu0 %v436_v22 }
 0x18c   : > { %v384_v23 = vpop.permute.xlu0 %383  ;;  %v316_v24 = vpop.permute.xlu1 %315 }
 0x18d   : > { %v428_v25 = vld [vmem:[#allocation3] sm:$0xff]  ;;  %386 = vst.msk [vmem:[#allocation3 + $0x50] sm:$0xf] %vm302_vm4, %v384_v23 }
 0x18e   : > { %318 = vst.msk [vmem:[#allocation3 + $0x8] sm:$0xf0] %vm300_vm0, %v316_v24  ;;  %636 = vmatpush3.bf16.msra.mxu0 %v428_v25 }
 0x190   : > { %v320_v26 = vpop.permute.xlu0 %319  ;;  %v388_v27 = vpop.permute.xlu1 %387 }
 0x191   : > { %v437_v28 = vld [vmem:[#allocation3 + $0x48] sm:$0xff]  ;;  %322 = vst.msk [vmem:[#allocation3 + $0x10] sm:$0xf] %vm302_vm4, %v320_v26 }
 0x192   : > { %390 = vst.msk [vmem:[#allocation3 + $0x50] sm:$0xf0] %vm300_vm0, %v388_v27  ;;  %637 = vmatprep.subr.bf16.mxu0 %v437_v28 }
 0x194   : > { %v392_v29 = vpop.permute.xlu0 %391  ;;  %v324_v30 = vpop.permute.xlu1 %323 }
 0x195   : > { %v429_v31 = vld [vmem:[#allocation3 + $0x8] sm:$0xff]  ;;  %394 = vst.msk [vmem:[#allocation3 + $0x58] sm:$0xf] %vm302_vm4, %v392_v29 }
 0x196   : > { %326 = vst.msk [vmem:[#allocation3 + $0x10] sm:$0xf0] %vm300_vm0, %v324_v30  ;;  %638 = vmatpush3.bf16.msra.mxu0 %v429_v31 }
 0x198   : > { %v328_v32 = vpop.permute.xlu0 %327  ;;  %v396_v33 = vpop.permute.xlu1 %395 }
 0x199   : > { %v438_v34 = vld [vmem:[#allocation3 + $0x50] sm:$0xff]  ;;  %330 = vst.msk [vmem:[#allocation3 + $0x18] sm:$0xf] %vm302_vm4, %v328_v32 }
 0x19a   : > { %398 = vst.msk [vmem:[#allocation3 + $0x58] sm:$0xf0] %vm300_vm0, %v396_v33  ;;  %639 = vmatprep.subr.bf16.mxu0 %v438_v34 }
 0x19c   : > { %v400_v35 = vpop.permute.xlu0 %399  ;;  %v332_v36 = vpop.permute.xlu1 %331 }
 0x19d   : > { %v430_v37 = vld [vmem:[#allocation3 + $0x10] sm:$0xff]  ;;  %402 = vst.msk [vmem:[#allocation3 + $0x60] sm:$0xf] %vm302_vm4, %v400_v35 }
 0x19e   : > { %334 = vst.msk [vmem:[#allocation3 + $0x18] sm:$0xf0] %vm300_vm0, %v332_v36  ;;  %640 = vmatpush3.bf16.msra.mxu0 %v430_v37 }
 0x1a0   : > { %v336_v38 = vpop.permute.xlu0 %335  ;;  %v404_v39 = vpop.permute.xlu1 %403 }
 0x1a1   : > { %v439_v40 = vld [vmem:[#allocation3 + $0x58] sm:$0xff]  ;;  %338 = vst.msk [vmem:[#allocation3 + $0x20] sm:$0xf] %vm302_vm4, %v336_v38 }
 0x1a2   : > { %406 = vst.msk [vmem:[#allocation3 + $0x60] sm:$0xf0] %vm300_vm0, %v404_v39  ;;  %641 = vmatprep.subr.bf16.mxu0 %v439_v40 }
 0x1a4   : > { %v408_v41 = vpop.permute.xlu0 %407  ;;  %v340_v42 = vpop.permute.xlu1 %339 }
 0x1a5   : > { %v431_v43 = vld [vmem:[#allocation3 + $0x18] sm:$0xff]  ;;  %410 = vst.msk [vmem:[#allocation3 + $0x68] sm:$0xf] %vm302_vm4, %v408_v41 }
 0x1a6   : > { %342 = vst.msk [vmem:[#allocation3 + $0x20] sm:$0xf0] %vm300_vm0, %v340_v42  ;;  %642 = vmatpush3.bf16.msra.mxu0 %v431_v43 }
 0x1a8   : > { %v344_v44 = vpop.permute.xlu0 %343  ;;  %v412_v45 = vpop.permute.xlu1 %411 }
 0x1a9   : > { %v440_v46 = vld [vmem:[#allocation3 + $0x60] sm:$0xff]  ;;  %346 = vst.msk [vmem:[#allocation3 + $0x28] sm:$0xf] %vm302_vm4, %v344_v44 }
 0x1aa   : > { %414 = vst.msk [vmem:[#allocation3 + $0x68] sm:$0xf0] %vm300_vm0, %v412_v45  ;;  %643 = vmatprep.subr.bf16.mxu0 %v440_v46 }
 0x1ac   : > { %v416_v47 = vpop.permute.xlu0 %415  ;;  %v348_v48 = vpop.permute.xlu1 %347 }
 0x1ad   : > { %v432_v49 = vld [vmem:[#allocation3 + $0x20] sm:$0xff]  ;;  %418 = vst.msk [vmem:[#allocation3 + $0x70] sm:$0xf] %vm302_vm4, %v416_v47 }
 0x1ae   : > { %350 = vst.msk [vmem:[#allocation3 + $0x28] sm:$0xf0] %vm300_vm0, %v348_v48  ;;  %644 = vmatpush3.bf16.msra.mxu0 %v432_v49 }
 0x1b0   : > { %v352_v50 = vpop.permute.xlu0 %351  ;;  %v420_v51 = vpop.permute.xlu1 %419 }
 0x1b1   : > { %v441_v52 = vld [vmem:[#allocation3 + $0x68] sm:$0xff]  ;;  %354 = vst.msk [vmem:[#allocation3 + $0x30] sm:$0xf] %vm302_vm4, %v352_v50 }
 0x1b2   : > { %422 = vst.msk [vmem:[#allocation3 + $0x70] sm:$0xf0] %vm300_vm0, %v420_v51  ;;  %645 = vmatprep.subr.bf16.mxu0 %v441_v52 }
 0x1b4   : > { %v424_v53 = vpop.permute.xlu0 %423  ;;  %v356_v54 = vpop.permute.xlu1 %355 }
 0x1b5   : > { %v433_v55 = vld [vmem:[#allocation3 + $0x28] sm:$0xff]  ;;  %426 = vst.msk [vmem:[#allocation3 + $0x78] sm:$0xf] %vm302_vm4, %v424_v53 }
 0x1b6   : > { %358 = vst.msk [vmem:[#allocation3 + $0x30] sm:$0xf0] %vm300_vm0, %v356_v54  ;;  %646 = vmatpush3.bf16.msra.mxu0 %v433_v55 }
 0x1b8   : > { %v364_v56 = vpop.permute.xlu0 %363  ;;  %v360_v57 = vpop.permute.xlu1 %359 }
 0x1b9   : > { %v442_v58 = vld [vmem:[#allocation3 + $0x70] sm:$0xff]  ;;  %366 = vst.msk [vmem:[#allocation3 + $0x38] sm:$0xf0] %vm300_vm0, %v364_v56 }
 0x1ba   : > { %362 = vst.msk [vmem:[#allocation3 + $0x38] sm:$0xf] %vm302_vm4, %v360_v57  ;;  %647 = vmatprep.subr.bf16.mxu0 %v442_v58 }
 0x1bc   : > { %v443_v60 = vld [vmem:[#allocation3 + $0x78] sm:$0xff] }
 0x1bd   : > { %v434_v59 = vld [vmem:[#allocation3 + $0x30] sm:$0xff] }
 0x1be   : > { %648 = vmatpush3.bf16.msra.mxu0 %v434_v59 }
 0x1bf   : > { %649 = vmatprep.subr.bf16.mxu0 %v443_v60 }
 0x1c1   : > { %v435_v61 = vld [vmem:[#allocation3 + $0x38] sm:$0xff] }
 0x1c2   : > { %650 = vmatpush3.bf16.msra.mxu0 %v435_v61 }
 0x1c5   : > { %484 = vmatmul.mubr.bf16.vlgmr.msra.gmra.mrb[0].mxu0 %v630_v62 }
 0x298   : > { %v651_v63 = vpop.f32.mrb[0].mxu0 }
 0x299   : > { %v652_v0 = vpop.f32.mrb[1].mxu0 }
 0x29a   : > { %v653_v1 = vadd.f32 %v652_v0, %v651_v63  ;;  %v654_v2 = vpop.f32.mrb[2].mxu0 }
 0x29b   : > { %v655_v3 = vpop.f32.mrb[3].mxu0 }
 0x29c   : > { %v502_v4 = vpack.c.bf16 %v653_v1, %v653_v1  ;;  %v492_v5 = vsel %vm491_vm5, %v653_v1, 0.0  ;;  %v497_v6 = vmul.f32 %v653_v1, %v653_v1 }
 0x29d   : > { %493 = vadd.xlane.f32.xlu1 %v492_v5 }
 0x29e   : > { %503 = vst.msk [vmem:[%s259_s23] sm:$0xf] %vm302_vm4, %v502_v4  ;;  %v498_v7 = vsel %vm491_vm5, %v497_v6, 0.0 }
 0x29f   : > { %499 = vadd.xlane.f32.xlu0 %v498_v7 }
 0x32a   : > { %v494_v8 = vpop.xlane.xlu1 %493 }
 0x32b   : > { %496 = vst.msk [vmem:[%s263_s28] sm:$0xff] %vm495_vm6, %v494_v8 }
 0x32c   : > { %v500_v9 = vpop.xlane.xlu0 %499 }
 0x32d   : > { %501 = vst.msk [vmem:[%s267_s27] sm:$0xff] %vm495_vm6, %v500_v9 }
 0x32e PF: > { %s17_s21 = sadd.s32 1, %s707_s21  }
 0x32f   : > { %p14_p4 = scmp.ge.s32.totalorder %s17_s21, 10  }
 0x331   :  { %16 = sbr.rel (!%p14_p4) target bundleno = 1 (0x1), region = 90 }

</bundles_post_ra>
